<compile_context>
chip_gen: v5e
topology: v5e:2x2
jax: 0.10.0
libtpu: 0.0.40
codegen_flags: <defaults>
</compile_context>

<pallas_src>
import math
import functools

import jax
import jax.numpy as jnp
from jax import lax
from jax.experimental import pallas as pl
from jax.experimental.pallas import tpu as pltpu


# ---------------------------------------------------------------------------
# Pallas kernel
# ---------------------------------------------------------------------------
def _rel_attn_kernel(q_ref, kp_ref, v_ref, bu_ref, bv_ref, mask_ref,
                     o_ref, quv_sc, m_sc, l_sc, acc_sc,
                     *, n_head, d_k, inv_sqrt_dk):
    """One (batch, T1-tile) x T2-tile step of relative-position attention.

    q_ref           : (tq, F)      bf16, all heads (F = n_head * d_k)
    kp_ref          : (tk, 2F)     per-head interleaved [k_h | p_h]
    v_ref           : (tk, F)
    bu_ref, bv_ref  : (1, F)       pos_bias_u / pos_bias_v flattened per head
    mask_ref        : (1|tq, tk)   0/1 mask
    o_ref           : (tq, F)      f32 attention context (all heads, lane-dense)
    quv_sc          : (tq, 2F)     [q+u | q+v] per head, built once per T1 tile
    m_sc, l_sc      : (H, tq, 1)   f32 running softmax max / denom per head
    acc_sc          : (tq, F)      f32 running output accumulator
    """
    j = pl.program_id(2)

    @pl.when(j == 0)
    def _init():
        m_sc[...] = jnp.full(m_sc.shape, -jnp.inf, dtype=jnp.float32)
        l_sc[...] = jnp.zeros(l_sc.shape, dtype=jnp.float32)
        acc_sc[...] = jnp.zeros(acc_sc.shape, dtype=jnp.float32)
        # Build [q + pos_bias_u | q + pos_bias_v] per head once per (b, T1-tile);
        # the adds are VPU filler hidden under the matmuls of later steps.
        q = q_ref[...]
        bu = bu_ref[...]
        bv = bv_ref[...]
        for h in range(n_head):
            lo, hi = h * d_k, (h + 1) * d_k
            qh = q[:, lo:hi]
            quv_sc[:, 2 * h * d_k:(2 * h + 1) * d_k] = qh + bu[:, lo:hi]
            quv_sc[:, (2 * h + 1) * d_k:(2 * h + 2) * d_k] = qh + bv[:, lo:hi]

    # Mask math in f32 (module semantics: scores*mask + (mask-1)*1000).
    mask_f = mask_ref[...].astype(jnp.float32)            # (1|tq, tk)
    rev_mask = (mask_f - 1.0) * 1000.0

    kp = kp_ref[...]
    v = v_ref[...]

    for h in range(n_head):
        lo, hi = h * d_k, (h + 1) * d_k
        lo2, hi2 = 2 * h * d_k, (2 * h + 2) * d_k

        # Fused matrix_ac + matrix_bd: one 2*d_k-deep MXU contraction, contiguous
        # lane slices on both operands, no in-kernel concatenate / relayout.
        s = lax.dot_general(quv_sc[:, lo2:hi2], kp[:, lo2:hi2],
                            (((1,), (1,)), ((), ())),
                            preferred_element_type=jnp.float32) * inv_sqrt_dk
        s = s * mask_f + rev_mask                                  # exact module masking

        # Online softmax update (f32 stats).
        m_prev = m_sc[h, :, :]
        l_prev = l_sc[h, :, :]
        m_new = jnp.maximum(m_prev, jnp.max(s, axis=-1, keepdims=True))
        alpha = jnp.exp(m_prev - m_new)
        e = jnp.exp(s - m_new)
        l_sc[h, :, :] = alpha * l_prev + jnp.sum(e, axis=-1, keepdims=True)
        m_sc[h, :, :] = m_new

        # attn = softmax(scores) * mask  ->  zero masked columns before @ V.
        pe = (e * mask_f).astype(v.dtype)
        acc_h = acc_sc[:, lo:hi]
        acc_sc[:, lo:hi] = alpha * acc_h + lax.dot_general(
            pe, v[:, lo:hi], (((1,), (0,)), ((), ())),
            preferred_element_type=jnp.float32)

    @pl.when(j == pl.num_programs(2) - 1)
    def _finalize():
        parts = []
        for h in range(n_head):
            lo, hi = h * d_k, (h + 1) * d_k
            inv_l = pl.reciprocal(l_sc[h, :, :], approx=True)      # EUP slot
            parts.append(acc_sc[:, lo:hi] * inv_l)
        # Single lane-dense (tq, F) store; HBM writeback is a full unmasked block.
        o_ref[...] = jnp.concatenate(parts, axis=-1).astype(o_ref.dtype)


# ---------------------------------------------------------------------------
# Tile selection (keeps (8,128) constraints and v7x 64 MiB VMEM budget)
# ---------------------------------------------------------------------------
def _pick_q_tile(t1, target=256):
    if t1 <= target:
        return t1
    for cand in (256, 128, 64, 32, 16, 8):
        if t1 % cand == 0:
            return cand
    return t1


def _pick_kv_tile(t2, target=512):
    # T2 tile is the lane dim of the mask block -> multiple of 128 (or full).
    if t2 <= target:
        return t2
    for cand in (512, 384, 256, 128):
        if t2 % cand == 0:
            return cand
    return t2


# ---------------------------------------------------------------------------
# Pallas wrapper: attention core over a (B, T1-tiles, T2-tiles) grid
# ---------------------------------------------------------------------------
def rel_pos_attention_core(q, kp, v, bias_u, bias_v, mask_f, n_head, d_k):
    """q:(B,T1,F)  kp:(B,T2,2F)  v:(B,T2,F)  bias_*:(1,F)  mask_f:(B,1|T1,T2)."""
    B, T1, F = q.shape
    T2 = v.shape[1]
    Tm = mask_f.shape[1]

    tq = _pick_q_tile(T1)
    tk = _pick_kv_tile(T2)
    n_t1 = T1 // tq
    n_t2 = T2 // tk
    mask_rows = 1 if Tm == 1 else tq

    kernel = functools.partial(_rel_attn_kernel, n_head=n_head, d_k=d_k,
                               inv_sqrt_dk=1.0 / math.sqrt(d_k))

    in_specs = [
        pl.BlockSpec((None, tq, F), lambda b, i, j: (b, i, 0)),        # q (all heads)
        pl.BlockSpec((None, tk, 2 * F), lambda b, i, j: (b, j, 0)),    # [k|p] interleaved
        pl.BlockSpec((None, tk, F), lambda b, i, j: (b, j, 0)),        # v
        pl.BlockSpec((1, F), lambda b, i, j: (0, 0)),                  # pos_bias_u
        pl.BlockSpec((1, F), lambda b, i, j: (0, 0)),                  # pos_bias_v
        pl.BlockSpec((None, mask_rows, tk),                            # mask
                     (lambda b, i, j: (b, 0, j)) if Tm == 1
                     else (lambda b, i, j: (b, i, j))),
    ]
    out_spec = pl.BlockSpec((None, tq, F), lambda b, i, j: (b, i, 0))

    return pl.pallas_call(
        kernel,
        out_shape=jax.ShapeDtypeStruct((B, T1, F), jnp.float32),
        grid=(B, n_t1, n_t2),
        in_specs=in_specs,
        out_specs=out_spec,
        scratch_shapes=[
            pltpu.VMEM((tq, 2 * F), q.dtype),           # [q+u | q+v] per head
            pltpu.VMEM((n_head, tq, 1), jnp.float32),   # running max
            pltpu.VMEM((n_head, tq, 1), jnp.float32),   # running denom
            pltpu.VMEM((tq, F), jnp.float32),           # running context accumulator
        ],
        compiler_params=pltpu.CompilerParams(
            dimension_semantics=("parallel", "parallel", "arbitrary"),
            # tiles above are sized to fit comfortably inside v7x's 64 MiB VMEM
            vmem_limit_bytes=48 * 1024 * 1024),
    )(q, kp, v, bias_u, bias_v, mask_f)


# ---------------------------------------------------------------------------
# Parameters & full module forward
# ---------------------------------------------------------------------------
def init_params(key, n_head, n_feat):
    """Deterministic synthetic parameter init (shapes match the nn.Module)."""
    d_k = n_feat // n_head
    ks = jax.random.split(key, 8)
    scale = 1.0 / math.sqrt(n_feat)
    xavier = math.sqrt(6.0 / (n_head * d_k + 1))
    return {
        "w_q":   jax.random.uniform(ks[0], (n_feat, n_feat), jnp.float32, -scale, scale),
        "b_q":   jax.random.uniform(ks[1], (n_feat,), jnp.float32, -scale, scale),
        "w_kv":  jax.random.uniform(ks[2], (n_feat, n_feat), jnp.float32, -scale, scale),
        "b_kv":  jax.random.uniform(ks[3], (n_feat,), jnp.float32, -scale, scale),
        "w_out": jax.random.uniform(ks[4], (n_feat, n_feat), jnp.float32, -scale, scale),
        "b_out": jax.random.uniform(ks[5], (n_feat,), jnp.float32, -scale, scale),
        "w_pos": jax.random.uniform(ks[6], (n_feat, n_feat), jnp.float32, -scale, scale),
        "pos_bias_u": jax.random.uniform(ks[7], (n_head, d_k), jnp.float32, -xavier, xavier),
        "pos_bias_v": jax.random.uniform(jax.random.fold_in(ks[7], 1),
                                         (n_head, d_k), jnp.float32, -xavier, xavier),
    }


def _linear(x, w, b=None):
    # PyTorch nn.Linear: y = x @ W.T + b, with W of shape (out, in)
    y = jnp.einsum("btf,gf->btg", x, w)
    if b is not None:
        y = y + b
    return y


def rel_pos_mha_forward(params, query, key, value, pos_emb, mask, n_head,
                        compute_dtype=jnp.bfloat16):
    """Forward pass of RelPositionMultiHeadedAttention (eval mode)."""
    B, T1, F = query.shape
    d_k = F // n_head
    T2 = key.shape[1]

    # Projections (kept in JAX). No (0,2,1,3) transposes: head h lives in the
    # feature slice [h*d_k : (h+1)*d_k], which the kernel indexes directly.
    q = _linear(query, params["w_q"], params["b_q"])          # (B, T1, F)
    k = _linear(key, params["w_kv"], params["b_kv"])          # (B, T2, F)
    v = _linear(value, params["w_kv"], params["b_kv"])        # (B, T2, F)
    p = _linear(pos_emb, params["w_pos"])                     # (n_pos, T2, F)
    assert p.shape[1] == T2, "this module variant expects pos_emb length == time2"
    n_pos = p.shape[0]
    assert n_pos in (1, B)

    # bf16 MXU inputs (f32 accumulate / f32 softmax stats in-kernel).
    q = q.astype(compute_dtype)
    k = k.astype(compute_dtype)
    v = v.astype(compute_dtype)
    p = p.astype(compute_dtype)
    bias_u = params["pos_bias_u"].reshape(1, F).astype(compute_dtype)
    bias_v = params["pos_bias_v"].reshape(1, F).astype(compute_dtype)

    # Per-head interleave of keys and projected positions: kp[..., 2h*d_k:(2h+2)*d_k]
    # = [k_h | p_h].  Pure layout plumbing in XLA; in-kernel DMA traffic is identical
    # to separate k/p streams, but removes per-(b, tile, head) concatenate copies.
    k4 = k.reshape(B, T2, n_head, d_k)
    p4 = p.reshape(n_pos, T2, n_head, d_k)
    if n_pos != B:
        p4 = jnp.broadcast_to(p4, (B, T2, n_head, d_k))
    kp = jnp.concatenate([k4, p4], axis=-1).reshape(B, T2, 2 * F)

    if mask is None:
        mask = jnp.ones((B, 1, T2), dtype=bool)
    mask_f = mask.astype(compute_dtype)                       # (B, 1|T1, T2), 0/1 exact

    ctx = rel_pos_attention_core(q, kp, v, bias_u, bias_v, mask_f, n_head, d_k)
    # ctx is already (B, T1, n_head*d_k) in the layout linear_out expects.
    # dropout: eval-mode identity.
    return _linear(ctx, params["w_out"], params["b_out"])


# ---------------------------------------------------------------------------
# Pure-JAX reference (mirrors the PyTorch code, with matching bf16 casts)
# ---------------------------------------------------------------------------
def _reference_forward(params, query, key, value, pos_emb, mask, n_head,
                       compute_dtype=jnp.bfloat16):
    B, T1, F = query.shape
    d_k = F // n_head
    q = _linear(query, params["w_q"], params["b_q"]).reshape(B, T1, n_head, d_k)
    k = _linear(key, params["w_kv"], params["b_kv"]).reshape(B, -1, n_head, d_k)
    v = _linear(value, params["w_kv"], params["b_kv"]).reshape(B, -1, n_head, d_k)
    n_pos = pos_emb.shape[0]
    p = _linear(pos_emb, params["w_pos"]).reshape(n_pos, -1, n_head, d_k)

    q_u = (q + params["pos_bias_u"]).astype(compute_dtype)
    q_v = (q + params["pos_bias_v"]).astype(compute_dtype)
    k = k.astype(compute_dtype)
    v = v.astype(compute_dtype)
    p = p.astype(compute_dtype)

    ac = jnp.einsum("bqhd,bkhd->bhqk", q_u, k, preferred_element_type=jnp.float32)
    if n_pos == 1:
        bd = jnp.einsum("bqhd,pkhd->bhqk", q_v, p, preferred_element_type=jnp.float32)
    else:
        bd = jnp.einsum("bqhd,bkhd->bhqk", q_v, p, preferred_element_type=jnp.float32)
    scores = (ac + bd) / math.sqrt(d_k)

    if mask is None:
        mask = jnp.ones((B, 1, scores.shape[-1]), dtype=bool)
    mask_f = mask.astype(jnp.float32)[:, None]
    rev = (mask_f - 1.0) * 1000.0
    scores = scores * mask_f + rev
    attn = jax.nn.softmax(scores, axis=-1) * mask_f
    x = jnp.einsum("bhqk,bkhd->bqhd", attn.astype(compute_dtype), v,
                   preferred_element_type=jnp.float32)
    x = x.reshape(B, T1, n_head * d_k).astype(jnp.float32)
    return _linear(x, params["w_out"], params["b_out"])


# ---------------------------------------------------------------------------
if __name__ == "__main__":
    n_head = 4
    n_feat = 32
    B, T = 2, 8          # time1 == time2 == T, pos_emb length == T

    root = jax.random.PRNGKey(0)
    k_param, k_q, k_k, k_v, k_pos = jax.random.split(root, 5)

    params = init_params(k_param, n_head, n_feat)

    query = jax.random.normal(k_q, (B, T, n_feat), jnp.float32)
    key = jax.random.normal(k_k, (B, T, n_feat), jnp.float32)
    value = jax.random.normal(k_v, (B, T, n_feat), jnp.float32)
    pos_emb = jax.random.normal(k_pos, (1, T, n_feat), jnp.float32)

    # mask: (B, 1, T2) boolean, valid lengths [8, 5]
    lengths = jnp.array([8, 5])
    mask = (jnp.arange(T)[None, None, :] < lengths[:, None, None])

    out = rel_pos_mha_forward(params, query, key, value, pos_emb, mask, n_head)
    out = jax.block_until_ready(out)

    ref = _reference_forward(params, query, key, value, pos_emb, mask, n_head)
    assert out.shape == (B, T, n_feat)
    assert jnp.allclose(out, ref, atol=2e-2, rtol=2e-2), "mismatch vs reference"

    print("KERNEL_OK")
</pallas_src>

<mosaic_0001>
module attributes {stable_mosaic.version = 11 : i64} {
  func.func @_rel_attn_kernel(%arg0: i32, %arg1: i32, %arg2: i32, %arg3: memref<1x8x32xbf16, #tpu.memory_space<vmem>>, %arg4: memref<1x8x64xbf16, #tpu.memory_space<vmem>>, %arg5: memref<1x8x32xbf16, #tpu.memory_space<vmem>>, %arg6: memref<1x32xbf16, #tpu.memory_space<vmem>>, %arg7: memref<1x32xbf16, #tpu.memory_space<vmem>>, %arg8: memref<1x1x8xbf16, #tpu.memory_space<vmem>>, %arg9: memref<1x8x32xf32, #tpu.memory_space<vmem>>, %arg10: memref<8x64xbf16, #tpu.memory_space<vmem>>, %arg11: memref<4x8x1xf32, #tpu.memory_space<vmem>>, %arg12: memref<4x8x1xf32, #tpu.memory_space<vmem>>, %arg13: memref<8x32xf32, #tpu.memory_space<vmem>>) attributes {dimension_semantics = [#tpu.dimension_semantics<parallel>, #tpu.dimension_semantics<parallel>, #tpu.dimension_semantics<arbitrary>], iteration_bounds = array<i64: 2, 1, 1>, scalar_prefetch = 0 : i64, scratch_operands = 4 : i64, tpu.core_type = #tpu.core_type<tc>, window_params = [{transform_indices = @transform_0, window_bounds = array<i64: 1, 8, 32>}, {transform_indices = @transform_1, window_bounds = array<i64: 1, 8, 64>}, {transform_indices = @transform_2, window_bounds = array<i64: 1, 8, 32>}, {pipeline_mode = #tpu.pipeline_mode<synchronous>, transform_indices = @transform_3, window_bounds = array<i64: 1, 32>}, {pipeline_mode = #tpu.pipeline_mode<synchronous>, transform_indices = @transform_4, window_bounds = array<i64: 1, 32>}, {transform_indices = @transform_5, window_bounds = array<i64: 1, 1, 8>}, {transform_indices = @transform_6, window_bounds = array<i64: 1, 8, 32>}]} {
    %c0_i32 = arith.constant 0 : i32
    %0 = arith.cmpi eq, %arg2, %c0_i32 : i32
    %1 = arith.extui %0 : i1 to i32
    %c0_i32_0 = arith.constant 0 : i32
    %2 = arith.cmpi ne, %1, %c0_i32_0 : i32
    scf.if %2 {
      %cst_96 = arith.constant 0xFF800000 : f32
      %181 = vector.broadcast %cst_96 : f32 to vector<4x8x1xf32>
      %c0_97 = arith.constant 0 : index
      %c0_98 = arith.constant 0 : index
      %c0_99 = arith.constant 0 : index
      %182 = vector.load %arg11[%c0_97, %c0_98, %c0_99] : memref<4x8x1xf32, #tpu.memory_space<vmem>>, vector<4x8x1xf32>
      tpu.vector_store %arg11[%c0_97, %c0_98, %c0_99], %181 {strides = array<i32>} : memref<4x8x1xf32, #tpu.memory_space<vmem>>, vector<4x8x1xf32>,
      %cst_100 = arith.constant 0.000000e+00 : f32
      %183 = vector.broadcast %cst_100 : f32 to vector<4x8x1xf32>
      %c0_101 = arith.constant 0 : index
      %c0_102 = arith.constant 0 : index
      %c0_103 = arith.constant 0 : index
      %184 = vector.load %arg12[%c0_101, %c0_102, %c0_103] : memref<4x8x1xf32, #tpu.memory_space<vmem>>, vector<4x8x1xf32>
      tpu.vector_store %arg12[%c0_101, %c0_102, %c0_103], %183 {strides = array<i32>} : memref<4x8x1xf32, #tpu.memory_space<vmem>>, vector<4x8x1xf32>,
      %cst_104 = arith.constant 0.000000e+00 : f32
      %185 = vector.broadcast %cst_104 : f32 to vector<8x32xf32>
      %c0_105 = arith.constant 0 : index
      %c0_106 = arith.constant 0 : index
      %186 = vector.load %arg13[%c0_105, %c0_106] : memref<8x32xf32, #tpu.memory_space<vmem>>, vector<8x32xf32>
      tpu.vector_store %arg13[%c0_105, %c0_106], %185 {strides = array<i32>} : memref<8x32xf32, #tpu.memory_space<vmem>>, vector<8x32xf32>,
      %c0_107 = arith.constant 0 : index
      %c0_108 = arith.constant 0 : index
      %c0_109 = arith.constant 0 : index
      %187 = vector.load %arg3[%c0_107, %c0_108, %c0_109] : memref<1x8x32xbf16, #tpu.memory_space<vmem>>, vector<1x8x32xbf16>
      %188 = vector.shape_cast %187 : vector<1x8x32xbf16> to vector<8x32xbf16>
      %c0_110 = arith.constant 0 : index
      %c0_111 = arith.constant 0 : index
      %189 = vector.load %arg6[%c0_110, %c0_111] : memref<1x32xbf16, #tpu.memory_space<vmem>>, vector<1x32xbf16>
      %c0_112 = arith.constant 0 : index
      %c0_113 = arith.constant 0 : index
      %190 = vector.load %arg7[%c0_112, %c0_113] : memref<1x32xbf16, #tpu.memory_space<vmem>>, vector<1x32xbf16>
      %191 = vector.extract_strided_slice %188 {offsets = [0, 0], sizes = [8, 8], strides = [1, 1]} : vector<8x32xbf16> to vector<8x8xbf16>
      %192 = vector.extract_strided_slice %189 {offsets = [0, 0], sizes = [1, 8], strides = [1, 1]} : vector<1x32xbf16> to vector<1x8xbf16>
      %193 = vector.broadcast %192 : vector<1x8xbf16> to vector<8x8xbf16>
      %194 = arith.addf %191, %193 : vector<8x8xbf16>
      %c0_114 = arith.constant 0 : index
      %c0_115 = arith.constant 0 : index
      %195 = vector.load %arg10[%c0_114, %c0_115] : memref<8x64xbf16, #tpu.memory_space<vmem>>, vector<8x8xbf16>
      tpu.vector_store %arg10[%c0_114, %c0_115], %194 {strides = array<i32>} : memref<8x64xbf16, #tpu.memory_space<vmem>>, vector<8x8xbf16>,
      %196 = vector.extract_strided_slice %190 {offsets = [0, 0], sizes = [1, 8], strides = [1, 1]} : vector<1x32xbf16> to vector<1x8xbf16>
      %197 = vector.broadcast %196 : vector<1x8xbf16> to vector<8x8xbf16>
      %198 = arith.addf %191, %197 : vector<8x8xbf16>
      %c0_116 = arith.constant 0 : index
      %c8_117 = arith.constant 8 : index
      %199 = vector.load %arg10[%c0_116, %c8_117] : memref<8x64xbf16, #tpu.memory_space<vmem>>, vector<8x8xbf16>
      tpu.vector_store %arg10[%c0_116, %c8_117], %198 {strides = array<i32>} : memref<8x64xbf16, #tpu.memory_space<vmem>>, vector<8x8xbf16>,
      %200 = vector.extract_strided_slice %188 {offsets = [0, 8], sizes = [8, 8], strides = [1, 1]} : vector<8x32xbf16> to vector<8x8xbf16>
      %201 = vector.extract_strided_slice %189 {offsets = [0, 8], sizes = [1, 8], strides = [1, 1]} : vector<1x32xbf16> to vector<1x8xbf16>
      %202 = vector.broadcast %201 : vector<1x8xbf16> to vector<8x8xbf16>
      %203 = arith.addf %200, %202 : vector<8x8xbf16>
      %c0_118 = arith.constant 0 : index
      %c16_119 = arith.constant 16 : index
      %204 = vector.load %arg10[%c0_118, %c16_119] : memref<8x64xbf16, #tpu.memory_space<vmem>>, vector<8x8xbf16>
      tpu.vector_store %arg10[%c0_118, %c16_119], %203 {strides = array<i32>} : memref<8x64xbf16, #tpu.memory_space<vmem>>, vector<8x8xbf16>,
      %205 = vector.extract_strided_slice %190 {offsets = [0, 8], sizes = [1, 8], strides = [1, 1]} : vector<1x32xbf16> to vector<1x8xbf16>
      %206 = vector.broadcast %205 : vector<1x8xbf16> to vector<8x8xbf16>
      %207 = arith.addf %200, %206 : vector<8x8xbf16>
      %c0_120 = arith.constant 0 : index
      %c24_121 = arith.constant 24 : index
      %208 = vector.load %arg10[%c0_120, %c24_121] : memref<8x64xbf16, #tpu.memory_space<vmem>>, vector<8x8xbf16>
      tpu.vector_store %arg10[%c0_120, %c24_121], %207 {strides = array<i32>} : memref<8x64xbf16, #tpu.memory_space<vmem>>, vector<8x8xbf16>,
      %209 = vector.extract_strided_slice %188 {offsets = [0, 16], sizes = [8, 8], strides = [1, 1]} : vector<8x32xbf16> to vector<8x8xbf16>
      %210 = vector.extract_strided_slice %189 {offsets = [0, 16], sizes = [1, 8], strides = [1, 1]} : vector<1x32xbf16> to vector<1x8xbf16>
      %211 = vector.broadcast %210 : vector<1x8xbf16> to vector<8x8xbf16>
      %212 = arith.addf %209, %211 : vector<8x8xbf16>
      %c0_122 = arith.constant 0 : index
      %c32_123 = arith.constant 32 : index
      %213 = vector.load %arg10[%c0_122, %c32_123] : memref<8x64xbf16, #tpu.memory_space<vmem>>, vector<8x8xbf16>
      tpu.vector_store %arg10[%c0_122, %c32_123], %212 {strides = array<i32>} : memref<8x64xbf16, #tpu.memory_space<vmem>>, vector<8x8xbf16>,
      %214 = vector.extract_strided_slice %190 {offsets = [0, 16], sizes = [1, 8], strides = [1, 1]} : vector<1x32xbf16> to vector<1x8xbf16>
      %215 = vector.broadcast %214 : vector<1x8xbf16> to vector<8x8xbf16>
      %216 = arith.addf %209, %215 : vector<8x8xbf16>
      %c0_124 = arith.constant 0 : index
      %c40 = arith.constant 40 : index
      %217 = vector.load %arg10[%c0_124, %c40] : memref<8x64xbf16, #tpu.memory_space<vmem>>, vector<8x8xbf16>
      tpu.vector_store %arg10[%c0_124, %c40], %216 {strides = array<i32>} : memref<8x64xbf16, #tpu.memory_space<vmem>>, vector<8x8xbf16>,
      %218 = vector.extract_strided_slice %188 {offsets = [0, 24], sizes = [8, 8], strides = [1, 1]} : vector<8x32xbf16> to vector<8x8xbf16>
      %219 = vector.extract_strided_slice %189 {offsets = [0, 24], sizes = [1, 8], strides = [1, 1]} : vector<1x32xbf16> to vector<1x8xbf16>
      %220 = vector.broadcast %219 : vector<1x8xbf16> to vector<8x8xbf16>
      %221 = arith.addf %218, %220 : vector<8x8xbf16>
      %c0_125 = arith.constant 0 : index
      %c48_126 = arith.constant 48 : index
      %222 = vector.load %arg10[%c0_125, %c48_126] : memref<8x64xbf16, #tpu.memory_space<vmem>>, vector<8x8xbf16>
      tpu.vector_store %arg10[%c0_125, %c48_126], %221 {strides = array<i32>} : memref<8x64xbf16, #tpu.memory_space<vmem>>, vector<8x8xbf16>,
      %223 = vector.extract_strided_slice %190 {offsets = [0, 24], sizes = [1, 8], strides = [1, 1]} : vector<1x32xbf16> to vector<1x8xbf16>
      %224 = vector.broadcast %223 : vector<1x8xbf16> to vector<8x8xbf16>
      %225 = arith.addf %218, %224 : vector<8x8xbf16>
      %c0_127 = arith.constant 0 : index
      %c56 = arith.constant 56 : index
      %226 = vector.load %arg10[%c0_127, %c56] : memref<8x64xbf16, #tpu.memory_space<vmem>>, vector<8x8xbf16>
      tpu.vector_store %arg10[%c0_127, %c56], %225 {strides = array<i32>} : memref<8x64xbf16, #tpu.memory_space<vmem>>, vector<8x8xbf16>,
    } else {
    }
    %c0 = arith.constant 0 : index
    %c0_1 = arith.constant 0 : index
    %c0_2 = arith.constant 0 : index
    %3 = vector.load %arg8[%c0, %c0_1, %c0_2] : memref<1x1x8xbf16, #tpu.memory_space<vmem>>, vector<1x1x8xbf16>
    %4 = vector.shape_cast %3 : vector<1x1x8xbf16> to vector<1x8xbf16>
    %5 = arith.extf %4 : vector<1x8xbf16> to vector<1x8xf32>
    %cst = arith.constant 1.000000e+00 : f32
    %6 = vector.broadcast %cst : f32 to vector<1x8xf32>
    %7 = arith.subf %5, %6 : vector<1x8xf32>
    %cst_3 = arith.constant 1.000000e+03 : f32
    %8 = vector.broadcast %cst_3 : f32 to vector<1x8xf32>
    %9 = arith.mulf %7, %8 : vector<1x8xf32>
    %c0_4 = arith.constant 0 : index
    %c0_5 = arith.constant 0 : index
    %c0_6 = arith.constant 0 : index
    %10 = vector.load %arg4[%c0_4, %c0_5, %c0_6] : memref<1x8x64xbf16, #tpu.memory_space<vmem>>, vector<1x8x64xbf16>
    %11 = vector.shape_cast %10 : vector<1x8x64xbf16> to vector<8x64xbf16>
    %c0_7 = arith.constant 0 : index
    %c0_8 = arith.constant 0 : index
    %c0_9 = arith.constant 0 : index
    %12 = vector.load %arg5[%c0_7, %c0_8, %c0_9] : memref<1x8x32xbf16, #tpu.memory_space<vmem>>, vector<1x8x32xbf16>
    %13 = vector.shape_cast %12 : vector<1x8x32xbf16> to vector<8x32xbf16>
    %c0_10 = arith.constant 0 : index
    %c0_11 = arith.constant 0 : index
    %14 = vector.load %arg10[%c0_10, %c0_11] : memref<8x64xbf16, #tpu.memory_space<vmem>>, vector<8x16xbf16>
    %15 = vector.extract_strided_slice %11 {offsets = [0, 0], sizes = [8, 16], strides = [1, 1]} : vector<8x64xbf16> to vector<8x16xbf16>
    %cst_12 = arith.constant dense<0.000000e+00> : vector<8x8xf32>
    %16 = tpu.matmul %14, %15, %cst_12 {dimension_numbers = #tpu.dot_dimension_numbers<[1], [1], [0], [0], [0, 0, 1, 0], [], []>} : vector<8x16xbf16>, vector<8x16xbf16>, vector<8x8xf32> -> vector<8x8xf32>
    %cst_13 = arith.constant 0.353553385 : f32
    %17 = vector.broadcast %cst_13 : f32 to vector<8x8xf32>
    %18 = arith.mulf %16, %17 : vector<8x8xf32>
    %19 = vector.broadcast %5 : vector<1x8xf32> to vector<8x8xf32>
    %20 = arith.mulf %18, %19 : vector<8x8xf32>
    %21 = vector.broadcast %9 : vector<1x8xf32> to vector<8x8xf32>
    %22 = arith.addf %20, %21 : vector<8x8xf32>
    %c0_14 = arith.constant 0 : index
    %c0_15 = arith.constant 0 : index
    %c0_16 = arith.constant 0 : index
    %23 = vector.load %arg11[%c0_14, %c0_15, %c0_16] : memref<4x8x1xf32, #tpu.memory_space<vmem>>, vector<1x8x1xf32>
    %24 = vector.shape_cast %23 : vector<1x8x1xf32> to vector<8x1xf32>
    %c0_17 = arith.constant 0 : index
    %c0_18 = arith.constant 0 : index
    %c0_19 = arith.constant 0 : index
    %25 = vector.load %arg12[%c0_17, %c0_18, %c0_19] : memref<4x8x1xf32, #tpu.memory_space<vmem>>, vector<1x8x1xf32>
    %26 = vector.shape_cast %25 : vector<1x8x1xf32> to vector<8x1xf32>
    %cst_20 = arith.constant dense<0xFF800000> : vector<8xf32>
    %27 = vector.multi_reduction <maximumf>, %22, %cst_20 [1] : vector<8x8xf32> to vector<8xf32>
    %28 = vector.shape_cast %27 : vector<8xf32> to vector<8x1xf32>
    %29 = arith.maximumf %24, %28 : vector<8x1xf32>
    %30 = arith.subf %24, %29 : vector<8x1xf32>
    %31 = math.exp %30 : vector<8x1xf32>
    %32 = vector.broadcast %29 : vector<8x1xf32> to vector<8x8xf32>
    %33 = arith.subf %22, %32 : vector<8x8xf32>
    %34 = math.exp %33 : vector<8x8xf32>
    %35 = arith.mulf %31, %26 : vector<8x1xf32>
    %cst_21 = arith.constant dense<0.000000e+00> : vector<8xf32>
    %36 = vector.multi_reduction <add>, %34, %cst_21 [1] : vector<8x8xf32> to vector<8xf32>
    %37 = vector.shape_cast %36 : vector<8xf32> to vector<8x1xf32>
    %38 = arith.addf %35, %37 : vector<8x1xf32>
    %c0_22 = arith.constant 0 : index
    %c0_23 = arith.constant 0 : index
    %c0_24 = arith.constant 0 : index
    %39 = vector.load %arg12[%c0_22, %c0_23, %c0_24] : memref<4x8x1xf32, #tpu.memory_space<vmem>>, vector<1x8x1xf32>
    %40 = vector.shape_cast %39 : vector<1x8x1xf32> to vector<8x1xf32>
    %41 = vector.shape_cast %38 : vector<8x1xf32> to vector<1x8x1xf32>
    tpu.vector_store %arg12[%c0_22, %c0_23, %c0_24], %41 {strides = array<i32>} : memref<4x8x1xf32, #tpu.memory_space<vmem>>, vector<1x8x1xf32>,
    %c0_25 = arith.constant 0 : index
    %c0_26 = arith.constant 0 : index
    %c0_27 = arith.constant 0 : index
    %42 = vector.load %arg11[%c0_25, %c0_26, %c0_27] : memref<4x8x1xf32, #tpu.memory_space<vmem>>, vector<1x8x1xf32>
    %43 = vector.shape_cast %42 : vector<1x8x1xf32> to vector<8x1xf32>
    %44 = vector.shape_cast %29 : vector<8x1xf32> to vector<1x8x1xf32>
    tpu.vector_store %arg11[%c0_25, %c0_26, %c0_27], %44 {strides = array<i32>} : memref<4x8x1xf32, #tpu.memory_space<vmem>>, vector<1x8x1xf32>,
    %45 = vector.broadcast %5 : vector<1x8xf32> to vector<8x8xf32>
    %46 = arith.mulf %34, %45 : vector<8x8xf32>
    %47 = arith.truncf %46 : vector<8x8xf32> to vector<8x8xbf16>
    %c0_28 = arith.constant 0 : index
    %c0_29 = arith.constant 0 : index
    %48 = vector.load %arg13[%c0_28, %c0_29] : memref<8x32xf32, #tpu.memory_space<vmem>>, vector<8x8xf32>
    %49 = vector.broadcast %31 : vector<8x1xf32> to vector<8x8xf32>
    %50 = arith.mulf %49, %48 : vector<8x8xf32>
    %51 = vector.extract_strided_slice %13 {offsets = [0, 0], sizes = [8, 8], strides = [1, 1]} : vector<8x32xbf16> to vector<8x8xbf16>
    %cst_30 = arith.constant dense<0.000000e+00> : vector<8x8xf32>
    %52 = tpu.matmul %47, %51, %cst_30 {dimension_numbers = #tpu.dot_dimension_numbers<[1], [0], [0], [1], [0, 0, 1, 1], [], []>} : vector<8x8xbf16>, vector<8x8xbf16>, vector<8x8xf32> -> vector<8x8xf32>
    %53 = arith.addf %50, %52 : vector<8x8xf32>
    %c0_31 = arith.constant 0 : index
    %c0_32 = arith.constant 0 : index
    %54 = vector.load %arg13[%c0_31, %c0_32] : memref<8x32xf32, #tpu.memory_space<vmem>>, vector<8x8xf32>
    tpu.vector_store %arg13[%c0_31, %c0_32], %53 {strides = array<i32>} : memref<8x32xf32, #tpu.memory_space<vmem>>, vector<8x8xf32>,
    %c0_33 = arith.constant 0 : index
    %c16 = arith.constant 16 : index
    %55 = vector.load %arg10[%c0_33, %c16] : memref<8x64xbf16, #tpu.memory_space<vmem>>, vector<8x16xbf16>
    %56 = vector.extract_strided_slice %11 {offsets = [0, 16], sizes = [8, 16], strides = [1, 1]} : vector<8x64xbf16> to vector<8x16xbf16>
    %cst_34 = arith.constant dense<0.000000e+00> : vector<8x8xf32>
    %57 = tpu.matmul %55, %56, %cst_34 {dimension_numbers = #tpu.dot_dimension_numbers<[1], [1], [0], [0], [0, 0, 1, 0], [], []>} : vector<8x16xbf16>, vector<8x16xbf16>, vector<8x8xf32> -> vector<8x8xf32>
    %cst_35 = arith.constant 0.353553385 : f32
    %58 = vector.broadcast %cst_35 : f32 to vector<8x8xf32>
    %59 = arith.mulf %57, %58 : vector<8x8xf32>
    %60 = vector.broadcast %5 : vector<1x8xf32> to vector<8x8xf32>
    %61 = arith.mulf %59, %60 : vector<8x8xf32>
    %62 = vector.broadcast %9 : vector<1x8xf32> to vector<8x8xf32>
    %63 = arith.addf %61, %62 : vector<8x8xf32>
    %c1 = arith.constant 1 : index
    %c0_36 = arith.constant 0 : index
    %c0_37 = arith.constant 0 : index
    %64 = vector.load %arg11[%c1, %c0_36, %c0_37] : memref<4x8x1xf32, #tpu.memory_space<vmem>>, vector<1x8x1xf32>
    %65 = vector.shape_cast %64 : vector<1x8x1xf32> to vector<8x1xf32>
    %c1_38 = arith.constant 1 : index
    %c0_39 = arith.constant 0 : index
    %c0_40 = arith.constant 0 : index
    %66 = vector.load %arg12[%c1_38, %c0_39, %c0_40] : memref<4x8x1xf32, #tpu.memory_space<vmem>>, vector<1x8x1xf32>
    %67 = vector.shape_cast %66 : vector<1x8x1xf32> to vector<8x1xf32>
    %cst_41 = arith.constant dense<0xFF800000> : vector<8xf32>
    %68 = vector.multi_reduction <maximumf>, %63, %cst_41 [1] : vector<8x8xf32> to vector<8xf32>
    %69 = vector.shape_cast %68 : vector<8xf32> to vector<8x1xf32>
    %70 = arith.maximumf %65, %69 : vector<8x1xf32>
    %71 = arith.subf %65, %70 : vector<8x1xf32>
    %72 = math.exp %71 : vector<8x1xf32>
    %73 = vector.broadcast %70 : vector<8x1xf32> to vector<8x8xf32>
    %74 = arith.subf %63, %73 : vector<8x8xf32>
    %75 = math.exp %74 : vector<8x8xf32>
    %76 = arith.mulf %72, %67 : vector<8x1xf32>
    %cst_42 = arith.constant dense<0.000000e+00> : vector<8xf32>
    %77 = vector.multi_reduction <add>, %75, %cst_42 [1] : vector<8x8xf32> to vector<8xf32>
    %78 = vector.shape_cast %77 : vector<8xf32> to vector<8x1xf32>
    %79 = arith.addf %76, %78 : vector<8x1xf32>
    %c1_43 = arith.constant 1 : index
    %c0_44 = arith.constant 0 : index
    %c0_45 = arith.constant 0 : index
    %80 = vector.load %arg12[%c1_43, %c0_44, %c0_45] : memref<4x8x1xf32, #tpu.memory_space<vmem>>, vector<1x8x1xf32>
    %81 = vector.shape_cast %80 : vector<1x8x1xf32> to vector<8x1xf32>
    %82 = vector.shape_cast %79 : vector<8x1xf32> to vector<1x8x1xf32>
    tpu.vector_store %arg12[%c1_43, %c0_44, %c0_45], %82 {strides = array<i32>} : memref<4x8x1xf32, #tpu.memory_space<vmem>>, vector<1x8x1xf32>,
    %c1_46 = arith.constant 1 : index
    %c0_47 = arith.constant 0 : index
    %c0_48 = arith.constant 0 : index
    %83 = vector.load %arg11[%c1_46, %c0_47, %c0_48] : memref<4x8x1xf32, #tpu.memory_space<vmem>>, vector<1x8x1xf32>
    %84 = vector.shape_cast %83 : vector<1x8x1xf32> to vector<8x1xf32>
    %85 = vector.shape_cast %70 : vector<8x1xf32> to vector<1x8x1xf32>
    tpu.vector_store %arg11[%c1_46, %c0_47, %c0_48], %85 {strides = array<i32>} : memref<4x8x1xf32, #tpu.memory_space<vmem>>, vector<1x8x1xf32>,
    %86 = vector.broadcast %5 : vector<1x8xf32> to vector<8x8xf32>
    %87 = arith.mulf %75, %86 : vector<8x8xf32>
    %88 = arith.truncf %87 : vector<8x8xf32> to vector<8x8xbf16>
    %c0_49 = arith.constant 0 : index
    %c8 = arith.constant 8 : index
    %89 = vector.load %arg13[%c0_49, %c8] : memref<8x32xf32, #tpu.memory_space<vmem>>, vector<8x8xf32>
    %90 = vector.broadcast %72 : vector<8x1xf32> to vector<8x8xf32>
    %91 = arith.mulf %90, %89 : vector<8x8xf32>
    %92 = vector.extract_strided_slice %13 {offsets = [0, 8], sizes = [8, 8], strides = [1, 1]} : vector<8x32xbf16> to vector<8x8xbf16>
    %cst_50 = arith.constant dense<0.000000e+00> : vector<8x8xf32>
    %93 = tpu.matmul %88, %92, %cst_50 {dimension_numbers = #tpu.dot_dimension_numbers<[1], [0], [0], [1], [0, 0, 1, 1], [], []>} : vector<8x8xbf16>, vector<8x8xbf16>, vector<8x8xf32> -> vector<8x8xf32>
    %94 = arith.addf %91, %93 : vector<8x8xf32>
    %c0_51 = arith.constant 0 : index
    %c8_52 = arith.constant 8 : index
    %95 = vector.load %arg13[%c0_51, %c8_52] : memref<8x32xf32, #tpu.memory_space<vmem>>, vector<8x8xf32>
    tpu.vector_store %arg13[%c0_51, %c8_52], %94 {strides = array<i32>} : memref<8x32xf32, #tpu.memory_space<vmem>>, vector<8x8xf32>,
    %c0_53 = arith.constant 0 : index
    %c32 = arith.constant 32 : index
    %96 = vector.load %arg10[%c0_53, %c32] : memref<8x64xbf16, #tpu.memory_space<vmem>>, vector<8x16xbf16>
    %97 = vector.extract_strided_slice %11 {offsets = [0, 32], sizes = [8, 16], strides = [1, 1]} : vector<8x64xbf16> to vector<8x16xbf16>
    %cst_54 = arith.constant dense<0.000000e+00> : vector<8x8xf32>
    %98 = tpu.matmul %96, %97, %cst_54 {dimension_numbers = #tpu.dot_dimension_numbers<[1], [1], [0], [0], [0, 0, 1, 0], [], []>} : vector<8x16xbf16>, vector<8x16xbf16>, vector<8x8xf32> -> vector<8x8xf32>
    %cst_55 = arith.constant 0.353553385 : f32
    %99 = vector.broadcast %cst_55 : f32 to vector<8x8xf32>
    %100 = arith.mulf %98, %99 : vector<8x8xf32>
    %101 = vector.broadcast %5 : vector<1x8xf32> to vector<8x8xf32>
    %102 = arith.mulf %100, %101 : vector<8x8xf32>
    %103 = vector.broadcast %9 : vector<1x8xf32> to vector<8x8xf32>
    %104 = arith.addf %102, %103 : vector<8x8xf32>
    %c2 = arith.constant 2 : index
    %c0_56 = arith.constant 0 : index
    %c0_57 = arith.constant 0 : index
    %105 = vector.load %arg11[%c2, %c0_56, %c0_57] : memref<4x8x1xf32, #tpu.memory_space<vmem>>, vector<1x8x1xf32>
    %106 = vector.shape_cast %105 : vector<1x8x1xf32> to vector<8x1xf32>
    %c2_58 = arith.constant 2 : index
    %c0_59 = arith.constant 0 : index
    %c0_60 = arith.constant 0 : index
    %107 = vector.load %arg12[%c2_58, %c0_59, %c0_60] : memref<4x8x1xf32, #tpu.memory_space<vmem>>, vector<1x8x1xf32>
    %108 = vector.shape_cast %107 : vector<1x8x1xf32> to vector<8x1xf32>
    %cst_61 = arith.constant dense<0xFF800000> : vector<8xf32>
    %109 = vector.multi_reduction <maximumf>, %104, %cst_61 [1] : vector<8x8xf32> to vector<8xf32>
    %110 = vector.shape_cast %109 : vector<8xf32> to vector<8x1xf32>
    %111 = arith.maximumf %106, %110 : vector<8x1xf32>
    %112 = arith.subf %106, %111 : vector<8x1xf32>
    %113 = math.exp %112 : vector<8x1xf32>
    %114 = vector.broadcast %111 : vector<8x1xf32> to vector<8x8xf32>
    %115 = arith.subf %104, %114 : vector<8x8xf32>
    %116 = math.exp %115 : vector<8x8xf32>
    %117 = arith.mulf %113, %108 : vector<8x1xf32>
    %cst_62 = arith.constant dense<0.000000e+00> : vector<8xf32>
    %118 = vector.multi_reduction <add>, %116, %cst_62 [1] : vector<8x8xf32> to vector<8xf32>
    %119 = vector.shape_cast %118 : vector<8xf32> to vector<8x1xf32>
    %120 = arith.addf %117, %119 : vector<8x1xf32>
    %c2_63 = arith.constant 2 : index
    %c0_64 = arith.constant 0 : index
    %c0_65 = arith.constant 0 : index
    %121 = vector.load %arg12[%c2_63, %c0_64, %c0_65] : memref<4x8x1xf32, #tpu.memory_space<vmem>>, vector<1x8x1xf32>
    %122 = vector.shape_cast %121 : vector<1x8x1xf32> to vector<8x1xf32>
    %123 = vector.shape_cast %120 : vector<8x1xf32> to vector<1x8x1xf32>
    tpu.vector_store %arg12[%c2_63, %c0_64, %c0_65], %123 {strides = array<i32>} : memref<4x8x1xf32, #tpu.memory_space<vmem>>, vector<1x8x1xf32>,
    %c2_66 = arith.constant 2 : index
    %c0_67 = arith.constant 0 : index
    %c0_68 = arith.constant 0 : index
    %124 = vector.load %arg11[%c2_66, %c0_67, %c0_68] : memref<4x8x1xf32, #tpu.memory_space<vmem>>, vector<1x8x1xf32>
    %125 = vector.shape_cast %124 : vector<1x8x1xf32> to vector<8x1xf32>
    %126 = vector.shape_cast %111 : vector<8x1xf32> to vector<1x8x1xf32>
    tpu.vector_store %arg11[%c2_66, %c0_67, %c0_68], %126 {strides = array<i32>} : memref<4x8x1xf32, #tpu.memory_space<vmem>>, vector<1x8x1xf32>,
    %127 = vector.broadcast %5 : vector<1x8xf32> to vector<8x8xf32>
    %128 = arith.mulf %116, %127 : vector<8x8xf32>
    %129 = arith.truncf %128 : vector<8x8xf32> to vector<8x8xbf16>
    %c0_69 = arith.constant 0 : index
    %c16_70 = arith.constant 16 : index
    %130 = vector.load %arg13[%c0_69, %c16_70] : memref<8x32xf32, #tpu.memory_space<vmem>>, vector<8x8xf32>
    %131 = vector.broadcast %113 : vector<8x1xf32> to vector<8x8xf32>
    %132 = arith.mulf %131, %130 : vector<8x8xf32>
    %133 = vector.extract_strided_slice %13 {offsets = [0, 16], sizes = [8, 8], strides = [1, 1]} : vector<8x32xbf16> to vector<8x8xbf16>
    %cst_71 = arith.constant dense<0.000000e+00> : vector<8x8xf32>
    %134 = tpu.matmul %129, %133, %cst_71 {dimension_numbers = #tpu.dot_dimension_numbers<[1], [0], [0], [1], [0, 0, 1, 1], [], []>} : vector<8x8xbf16>, vector<8x8xbf16>, vector<8x8xf32> -> vector<8x8xf32>
    %135 = arith.addf %132, %134 : vector<8x8xf32>
    %c0_72 = arith.constant 0 : index
    %c16_73 = arith.constant 16 : index
    %136 = vector.load %arg13[%c0_72, %c16_73] : memref<8x32xf32, #tpu.memory_space<vmem>>, vector<8x8xf32>
    tpu.vector_store %arg13[%c0_72, %c16_73], %135 {strides = array<i32>} : memref<8x32xf32, #tpu.memory_space<vmem>>, vector<8x8xf32>,
    %c0_74 = arith.constant 0 : index
    %c48 = arith.constant 48 : index
    %137 = vector.load %arg10[%c0_74, %c48] : memref<8x64xbf16, #tpu.memory_space<vmem>>, vector<8x16xbf16>
    %138 = vector.extract_strided_slice %11 {offsets = [0, 48], sizes = [8, 16], strides = [1, 1]} : vector<8x64xbf16> to vector<8x16xbf16>
    %cst_75 = arith.constant dense<0.000000e+00> : vector<8x8xf32>
    %139 = tpu.matmul %137, %138, %cst_75 {dimension_numbers = #tpu.dot_dimension_numbers<[1], [1], [0], [0], [0, 0, 1, 0], [], []>} : vector<8x16xbf16>, vector<8x16xbf16>, vector<8x8xf32> -> vector<8x8xf32>
    %cst_76 = arith.constant 0.353553385 : f32
    %140 = vector.broadcast %cst_76 : f32 to vector<8x8xf32>
    %141 = arith.mulf %139, %140 : vector<8x8xf32>
    %142 = vector.broadcast %5 : vector<1x8xf32> to vector<8x8xf32>
    %143 = arith.mulf %141, %142 : vector<8x8xf32>
    %144 = vector.broadcast %9 : vector<1x8xf32> to vector<8x8xf32>
    %145 = arith.addf %143, %144 : vector<8x8xf32>
    %c3 = arith.constant 3 : index
    %c0_77 = arith.constant 0 : index
    %c0_78 = arith.constant 0 : index
    %146 = vector.load %arg11[%c3, %c0_77, %c0_78] : memref<4x8x1xf32, #tpu.memory_space<vmem>>, vector<1x8x1xf32>
    %147 = vector.shape_cast %146 : vector<1x8x1xf32> to vector<8x1xf32>
    %c3_79 = arith.constant 3 : index
    %c0_80 = arith.constant 0 : index
    %c0_81 = arith.constant 0 : index
    %148 = vector.load %arg12[%c3_79, %c0_80, %c0_81] : memref<4x8x1xf32, #tpu.memory_space<vmem>>, vector<1x8x1xf32>
    %149 = vector.shape_cast %148 : vector<1x8x1xf32> to vector<8x1xf32>
    %cst_82 = arith.constant dense<0xFF800000> : vector<8xf32>
    %150 = vector.multi_reduction <maximumf>, %145, %cst_82 [1] : vector<8x8xf32> to vector<8xf32>
    %151 = vector.shape_cast %150 : vector<8xf32> to vector<8x1xf32>
    %152 = arith.maximumf %147, %151 : vector<8x1xf32>
    %153 = arith.subf %147, %152 : vector<8x1xf32>
    %154 = math.exp %153 : vector<8x1xf32>
    %155 = vector.broadcast %152 : vector<8x1xf32> to vector<8x8xf32>
    %156 = arith.subf %145, %155 : vector<8x8xf32>
    %157 = math.exp %156 : vector<8x8xf32>
    %158 = arith.mulf %154, %149 : vector<8x1xf32>
    %cst_83 = arith.constant dense<0.000000e+00> : vector<8xf32>
    %159 = vector.multi_reduction <add>, %157, %cst_83 [1] : vector<8x8xf32> to vector<8xf32>
    %160 = vector.shape_cast %159 : vector<8xf32> to vector<8x1xf32>
    %161 = arith.addf %158, %160 : vector<8x1xf32>
    %c3_84 = arith.constant 3 : index
    %c0_85 = arith.constant 0 : index
    %c0_86 = arith.constant 0 : index
    %162 = vector.load %arg12[%c3_84, %c0_85, %c0_86] : memref<4x8x1xf32, #tpu.memory_space<vmem>>, vector<1x8x1xf32>
    %163 = vector.shape_cast %162 : vector<1x8x1xf32> to vector<8x1xf32>
    %164 = vector.shape_cast %161 : vector<8x1xf32> to vector<1x8x1xf32>
    tpu.vector_store %arg12[%c3_84, %c0_85, %c0_86], %164 {strides = array<i32>} : memref<4x8x1xf32, #tpu.memory_space<vmem>>, vector<1x8x1xf32>,
    %c3_87 = arith.constant 3 : index
    %c0_88 = arith.constant 0 : index
    %c0_89 = arith.constant 0 : index
    %165 = vector.load %arg11[%c3_87, %c0_88, %c0_89] : memref<4x8x1xf32, #tpu.memory_space<vmem>>, vector<1x8x1xf32>
    %166 = vector.shape_cast %165 : vector<1x8x1xf32> to vector<8x1xf32>
    %167 = vector.shape_cast %152 : vector<8x1xf32> to vector<1x8x1xf32>
    tpu.vector_store %arg11[%c3_87, %c0_88, %c0_89], %167 {strides = array<i32>} : memref<4x8x1xf32, #tpu.memory_space<vmem>>, vector<1x8x1xf32>,
    %168 = vector.broadcast %5 : vector<1x8xf32> to vector<8x8xf32>
    %169 = arith.mulf %157, %168 : vector<8x8xf32>
    %170 = arith.truncf %169 : vector<8x8xf32> to vector<8x8xbf16>
    %c0_90 = arith.constant 0 : index
    %c24 = arith.constant 24 : index
    %171 = vector.load %arg13[%c0_90, %c24] : memref<8x32xf32, #tpu.memory_space<vmem>>, vector<8x8xf32>
    %172 = vector.broadcast %154 : vector<8x1xf32> to vector<8x8xf32>
    %173 = arith.mulf %172, %171 : vector<8x8xf32>
    %174 = vector.extract_strided_slice %13 {offsets = [0, 24], sizes = [8, 8], strides = [1, 1]} : vector<8x32xbf16> to vector<8x8xbf16>
    %cst_91 = arith.constant dense<0.000000e+00> : vector<8x8xf32>
    %175 = tpu.matmul %170, %174, %cst_91 {dimension_numbers = #tpu.dot_dimension_numbers<[1], [0], [0], [1], [0, 0, 1, 1], [], []>} : vector<8x8xbf16>, vector<8x8xbf16>, vector<8x8xf32> -> vector<8x8xf32>
    %176 = arith.addf %173, %175 : vector<8x8xf32>
    %c0_92 = arith.constant 0 : index
    %c24_93 = arith.constant 24 : index
    %177 = vector.load %arg13[%c0_92, %c24_93] : memref<8x32xf32, #tpu.memory_space<vmem>>, vector<8x8xf32>
    tpu.vector_store %arg13[%c0_92, %c24_93], %176 {strides = array<i32>} : memref<8x32xf32, #tpu.memory_space<vmem>>, vector<8x8xf32>,
    %c0_i32_94 = arith.constant 0 : i32
    %178 = arith.cmpi eq, %arg2, %c0_i32_94 : i32
    %179 = arith.extui %178 : i1 to i32
    %c0_i32_95 = arith.constant 0 : i32
    %180 = arith.cmpi ne, %179, %c0_i32_95 : i32
    scf.if %180 {
      %c0_96 = arith.constant 0 : index
      %c0_97 = arith.constant 0 : index
      %c0_98 = arith.constant 0 : index
      %181 = vector.load %arg12[%c0_96, %c0_97, %c0_98] : memref<4x8x1xf32, #tpu.memory_space<vmem>>, vector<1x8x1xf32>
      %182 = vector.shape_cast %181 : vector<1x8x1xf32> to vector<8x1xf32>
      %183 = tpu.reciprocal %182 {approx = true} : vector<8x1xf32> -> vector<8x1xf32>
      %c0_99 = arith.constant 0 : index
      %c0_100 = arith.constant 0 : index
      %184 = vector.load %arg13[%c0_99, %c0_100] : memref<8x32xf32, #tpu.memory_space<vmem>>, vector<8x8xf32>
      %185 = vector.broadcast %183 : vector<8x1xf32> to vector<8x8xf32>
      %186 = arith.mulf %184, %185 : vector<8x8xf32>
      %c1_101 = arith.constant 1 : index
      %c0_102 = arith.constant 0 : index
      %c0_103 = arith.constant 0 : index
      %187 = vector.load %arg12[%c1_101, %c0_102, %c0_103] : memref<4x8x1xf32, #tpu.memory_space<vmem>>, vector<1x8x1xf32>
      %188 = vector.shape_cast %187 : vector<1x8x1xf32> to vector<8x1xf32>
      %189 = tpu.reciprocal %188 {approx = true} : vector<8x1xf32> -> vector<8x1xf32>
      %c0_104 = arith.constant 0 : index
      %c8_105 = arith.constant 8 : index
      %190 = vector.load %arg13[%c0_104, %c8_105] : memref<8x32xf32, #tpu.memory_space<vmem>>, vector<8x8xf32>
      %191 = vector.broadcast %189 : vector<8x1xf32> to vector<8x8xf32>
      %192 = arith.mulf %190, %191 : vector<8x8xf32>
      %c2_106 = arith.constant 2 : index
      %c0_107 = arith.constant 0 : index
      %c0_108 = arith.constant 0 : index
      %193 = vector.load %arg12[%c2_106, %c0_107, %c0_108] : memref<4x8x1xf32, #tpu.memory_space<vmem>>, vector<1x8x1xf32>
      %194 = vector.shape_cast %193 : vector<1x8x1xf32> to vector<8x1xf32>
      %195 = tpu.reciprocal %194 {approx = true} : vector<8x1xf32> -> vector<8x1xf32>
      %c0_109 = arith.constant 0 : index
      %c16_110 = arith.constant 16 : index
      %196 = vector.load %arg13[%c0_109, %c16_110] : memref<8x32xf32, #tpu.memory_space<vmem>>, vector<8x8xf32>
      %197 = vector.broadcast %195 : vector<8x1xf32> to vector<8x8xf32>
      %198 = arith.mulf %196, %197 : vector<8x8xf32>
      %c3_111 = arith.constant 3 : index
      %c0_112 = arith.constant 0 : index
      %c0_113 = arith.constant 0 : index
      %199 = vector.load %arg12[%c3_111, %c0_112, %c0_113] : memref<4x8x1xf32, #tpu.memory_space<vmem>>, vector<1x8x1xf32>
      %200 = vector.shape_cast %199 : vector<1x8x1xf32> to vector<8x1xf32>
      %201 = tpu.reciprocal %200 {approx = true} : vector<8x1xf32> -> vector<8x1xf32>
      %c0_114 = arith.constant 0 : index
      %c24_115 = arith.constant 24 : index
      %202 = vector.load %arg13[%c0_114, %c24_115] : memref<8x32xf32, #tpu.memory_space<vmem>>, vector<8x8xf32>
      %203 = vector.broadcast %201 : vector<8x1xf32> to vector<8x8xf32>
      %204 = arith.mulf %202, %203 : vector<8x8xf32>
      %205 = tpu.concatenate %186, %192, %198, %204 in 1 : vector<8x8xf32>, vector<8x8xf32>, vector<8x8xf32>, vector<8x8xf32> -> vector<8x32xf32>
      %c0_116 = arith.constant 0 : index
      %c0_117 = arith.constant 0 : index
      %c0_118 = arith.constant 0 : index
      %206 = vector.load %arg9[%c0_116, %c0_117, %c0_118] : memref<1x8x32xf32, #tpu.memory_space<vmem>>, vector<1x8x32xf32>
      %207 = vector.shape_cast %206 : vector<1x8x32xf32> to vector<8x32xf32>
      %208 = vector.shape_cast %205 : vector<8x32xf32> to vector<1x8x32xf32>
      tpu.vector_store %arg9[%c0_116, %c0_117, %c0_118], %208 {strides = array<i32>} : memref<1x8x32xf32, #tpu.memory_space<vmem>>, vector<1x8x32xf32>,
    } else {
    }
    return
  }
  func.func @transform_0(%arg0: i32, %arg1: i32, %arg2: i32) -> (i32, i32, i32) {
    %c0_i32 = arith.constant 0 : i32
    %c0_i32_0 = arith.constant 0 : i32
    return %arg0, %arg1, %c0_i32 : i32, i32, i32
  }
  func.func @transform_1(%arg0: i32, %arg1: i32, %arg2: i32) -> (i32, i32, i32) {
    %c0_i32 = arith.constant 0 : i32
    %c0_i32_0 = arith.constant 0 : i32
    return %arg0, %arg2, %c0_i32 : i32, i32, i32
  }
  func.func @transform_2(%arg0: i32, %arg1: i32, %arg2: i32) -> (i32, i32, i32) {
    %c0_i32 = arith.constant 0 : i32
    %c0_i32_0 = arith.constant 0 : i32
    return %arg0, %arg2, %c0_i32 : i32, i32, i32
  }
  func.func @transform_3(%arg0: i32, %arg1: i32, %arg2: i32) -> (i32, i32) {
    %c0_i32 = arith.constant 0 : i32
    %c0_i32_0 = arith.constant 0 : i32
    %c0_i32_1 = arith.constant 0 : i32
    return %c0_i32, %c0_i32_0 : i32, i32
  }
  func.func @transform_4(%arg0: i32, %arg1: i32, %arg2: i32) -> (i32, i32) {
    %c0_i32 = arith.constant 0 : i32
    %c0_i32_0 = arith.constant 0 : i32
    %c0_i32_1 = arith.constant 0 : i32
    return %c0_i32, %c0_i32_0 : i32, i32
  }
  func.func @transform_5(%arg0: i32, %arg1: i32, %arg2: i32) -> (i32, i32, i32) {
    %c0_i32 = arith.constant 0 : i32
    %c0_i32_0 = arith.constant 0 : i32
    return %arg0, %c0_i32, %arg2 : i32, i32, i32
  }
  func.func @transform_6(%arg0: i32, %arg1: i32, %arg2: i32) -> (i32, i32, i32) {
    %c0_i32 = arith.constant 0 : i32
    %c0_i32_0 = arith.constant 0 : i32
    return %arg0, %arg1, %c0_i32 : i32, i32, i32
  }
}

</mosaic_0001>

<bundles_post_ra>
// kernel: tpu_custom_call.1
= control target key start
LH: loop header
LB: loop body
LE: loop exit
PB: predicated region body
PF: predicated region fallthrough
CT: control target
= control target key end

     0   :  { %s1697_s0 = inlined_call_operand.hbm [shape: bf16[2,8,32], index: 0, kind: input, shape index: {}]   ;;  %s1698_s1 = inlined_call_operand.hbm [shape: bf16[2,8,64], index: 1, kind: input, shape index: {}]   ;;  %s1699_s2 = inlined_call_operand.hbm [shape: bf16[2,8,32], index: 2, kind: input, shape index: {}]   ;;  %s1700_s3 = inlined_call_operand.vmem [shape: bf16[1,32], index: 3, kind: input, shape index: {}]   ;;  %s1701_s4 = inlined_call_operand.vmem [shape: bf16[1,32], index: 4, kind: input, shape index: {}]   ;;  %s1702_s5 = inlined_call_operand.vmem [shape: bf16[2,1,8], index: 5, kind: input, shape index: {}]   ;;  %s1703_s6 = inlined_call_operand.hbm [shape: f32[2,8,32], index: 6, kind: output, shape index: {}]  }
   0x1   :  { %1710 = sst [smem:[#allocation22_spill]] %s1698_s1 }
   0x2   :  { %11 = vsyncpa [#allocation7], 0 }
   0x3   :  { %13 = vsyncpa [#allocation7 + $0x1], 0 }
   0x4   :  { %14 = vsyncpa [#allocation10], 0 }
   0x5   :  { %16 = vsyncpa [#allocation10 + $0x1], 0 }
   0x6   :  { %17 = vsyncpa [#allocation8], 0 }
   0x7   :  { %19 = vsyncpa [#allocation8 + $0x1], 0  ;;  %s1409_s21 = smov 0   ;;  %s1411_s22 = smov 0  }
   0x8   :  { %s1413_s23 = smov 0   ;;  %s1415_s24 = smov 0  }
   0x9   :  { %s1417_s25 = smov 0   ;;  %s1419_s26 = smov 0  }
   0xa LB: > { %1711 = sst [smem:[#allocation16_spill]] %s1348_s23  ;;  %s1440_s27 = sadd.s32 4294967295, %s1360_s26   ;;  %s1360_s26 = sphi %s1419_s26, %s25_s26   ;;  %s1356_s25 = sphi %s1417_s25, %s1729_s25   ;;  %s1352_s24 = sphi %s1415_s24, %s1728_s24   ;;  %s1348_s23 = sphi %s1413_s23, %s1727_s23   ;;  %s1344_s22 = sphi %s1411_s22, %s1731_s22   ;;  %s1340_s21 = sphi %s1409_s21, %s1730_s21  }
   0xb   : > { %1712 = sst [smem:[#allocation17_spill]] %s1356_s25  ;;  %s1046_s28 = sadd.s32 4294967294, %s1360_s26  }
   0xc   : > { %1713 = sst [smem:[#allocation18_spill]] %s1360_s26  ;;  %s44_s29 = sadd.s32 1, %s1356_s25 }
   0xd   : > { %s53_s30 = sadd.s32 1, %s1348_s23  ;;  %p46_p0 = scmp.ge.s32.totalorder %s44_s29, 2 }
   0xe   : > { %p60_p1 = scmp.ne.s32.totalorder %s1348_s23, %s1344_s22  ;;  %p61_p2 = scmp.eq.s32.totalorder %s1360_s26, 0 }
   0xf   : > { %p66_p3 = scmp.ne.s32.totalorder %s1344_s22, %s1340_s21  ;;  %s1733_s29 = smov (%p46_p0, %s44_s29), 0 }
  0x10   : > { %1714 = sst [smem:[#allocation19_spill]] %s1733_s29  ;;  %p1452_p4 = por %p61_p2, %p60_p1 }
  0x11   : > { %p67_p5 = scmp.eq.s32.totalorder %s1440_s27, 0  ;;  %s48_s8 = ssub.s32 %s1356_s25, %s1733_s29 }
  0x12   : > { %p218_p6 = scmp.eq.s32.totalorder %s1440_s27, 1  ;;  %p51_p7 = scmp.eq.s32.totalorder %s48_s8, 0 }
  0x13   : > { %p1460_p8 = por %p67_p5, %p66_p3  ;;  %p224_p10 = scmp.eq.s32.totalorder %s1046_s28, 1 }
  0x14   : > { %p1464_p9 = por %p218_p6, %p60_p1  ;;  %p1048_p12 = scmp.ge.s32.totalorder %s1360_s26, 2 }
  0x15   : > { %s1469_s11 = scalar_select %p51_p7, %s1348_s23, %s53_s30  }
  0x16   : > { %p1471_p11 = por %p224_p10, %p66_p3  ;;  %p1095_p13 = scmp.lt.s32.totalorder %s1360_s26, 2 }
  0x17   : > { %1718 = sst [smem:[#allocation20_spill]] %s1469_s11  ;;  %s250_s13 = sand.u32 1, %s1348_s23  }
  0x18   : > { %s1719_s12 = scalar_select %p1471_p11, 1, 0 }
  0x19   : > { %s1049_s14 = sshll.u32 %s250_s13, 2  ;;  %s1050_s15 = sshll.u32 %s1356_s25, 2 }
  0x1a   : > { %1720 = sst [smem:[#allocation21_spill]] %s1719_s12  ;;  %p1481_p0 = pnand %p1095_p13, %p1452_p4 }
  0x1b   : > { %s270_s17 = sand.u32 1, %s1360_s26   ;;  %s1722_s1 = sld [smem:[#allocation22_spill]] }
  0x1c   : > { %s274_s30 = scalar_lea.vmem [#allocation9], %s1049_s14  ;;  %s271_s29 = scalar_lea.sflag [#allocation10], %s270_s17 }
  0x1d   : > { %s283_s8 = sshll.u32 %s274_s30, 4  ;;  %p1055_p1 = scmp.ge.s32.totalorder %s1360_s26, 1  ;;  %s284_s8 = int_to_ptr.vmem [resolvable:$true] %s283_s8 }
  0x1e   : > { %p317_p2 = scmp.lt.s32.totalorder %s1360_s26, 3  ;;  %s259_s18 = scalar_lea.hbm %s1697_s0, %s1050_s15 }
  0x1f   : > { %s261_s19 = sshll.u32 %s259_s18, 4  ;;  %s251_s30 = scalar_lea.sflag [#allocation7], %s250_s13  ;;  %s262_s19 = int_to_ptr.hbm [resolvable:$true] %s261_s19 }
  0x20   : > { %p1493_p3 = pnand %p1055_p1, %p317_p2  ;;  %s294_s26 = scalar_lea.vmem [#allocation11], %s1049_s14 }
  0x21   : > { %s279_s20 = scalar_lea.hbm %s1722_s1, %s1050_s15  ;;  %s303_s12 = sshll.u32 %s294_s26, 4  ;;  %s304_s12 = int_to_ptr.vmem [resolvable:$true] %s303_s12 }
  0x22   : > { %s281_s28 = sshll.u32 %s279_s20, 4  ;;  %s254_s20 = scalar_lea.vmem [#allocation6], %s1049_s14  ;;  %s282_s28 = int_to_ptr.hbm [resolvable:$true] %s281_s28 }
  0x23   : > { %1087 = dma.hbm_to_vmem [thread:$0]  (!%p1481_p0), %s282_s28, 64, %s284_s8, %s271_s29  }
  0x24   : > { %s263_s1 = sshll.u32 %s254_s20, 4  ;;  %s299_s8 = scalar_lea.hbm %s1699_s2, %s1050_s15  ;;  %s264_s1 = int_to_ptr.vmem [resolvable:$true] %s263_s1 }
  0x25   : > { %1084 = dma.hbm_to_vmem [thread:$0]  (!%p1481_p0), %s262_s19, 64, %s264_s1, %s251_s30  }
  0x26   : > { %s301_s23 = sshll.u32 %s299_s8, 4  ;;  %321 = sbr.rel (%p1493_p3) target bundleno = 1363 (0x553), region = 44  ;;  %s302_s23 = int_to_ptr.hbm [resolvable:$true] %s301_s23 }
  0x27   : > { %1090 = dma.hbm_to_vmem [thread:$0]  (!%p1481_p0), %s302_s23, 64, %s304_s12, %s271_s29  }
  0x28   : > { %s1510_s25 = sand.u32 (!%p1493_p3), 1, %s1344_s22  }
  0x29   : > { %s1513_s1 = sshll.u32 (!%p1493_p3), %s1510_s25, 2  ;;  %s324_s11 = scalar_lea.sflag (!%p1493_p3), [#allocation7], %s1510_s25 }
  0x2a   : > { %s327_s13 = scalar_lea.vmem (!%p1493_p3), [#allocation6], %s1513_s1 }
  0x2b   : > { %1327 = dma.done.wait (%p1460_p8), %s324_s11, 64  }
  0x2c   : > { %1329 = vsyncadd (%p1460_p8), %s324_s11, 4294967232  ;;  %s333_s23 = sand.u32 1, %s1440_s27   ;;  %s337_s29 = scalar_lea.vmem [#allocation9], %s1513_s1 }
  0x2d   : > { %s334_s26 = scalar_lea.sflag [#allocation10], %s333_s23 }
  0x2e   : > { %1331 = dma.done.wait (%p1460_p8), %s334_s26, 128  }
  0x2f   : > { %1333 = vsyncadd (%p1460_p8), %s334_s26, 4294967168  ;;  %v415_v0 = vld [vmem:[%s327_s13] sm:$0xf]  ;;  %v417_v1 = vld [vmem:[%s1701_s4] sm:$0x1]  ;;  %vm426_vm0 = vcmask 60416  }
  0x30   : > { %v416_v2 = vld [vmem:[%s1700_s3] sm:$0x1]  ;;  %v429_v3 = vpack.i.b16 %v417_v1, %v417_v1  ;;  %v422_v5 = vunpack.c.l.bf16 %v415_v0  ;;  %s1362_s27 = smov 8   ;;  %s1363_s9 = smov 16   ;;  %v476_v14 = vld [vmem:[%s337_s29] sm:$0xf] }
  0x31   : > { %v419_v4 = vpack.i.b16 %v416_v2, %v416_v2  ;;  %s1364_s7 = smov 24   ;;  %s1365_s18 = smov 32   ;;  %vm479_vm1 = vcmask 130048   ;;  %vm439_vm2 = vcmask 126016   ;;  %vm445_vm3 = vcmask 191616  }
  0x32   : > { %v431_v6 = vperm.slane %v429_v3, 0  ;;  %v484_v15 = vsel %vm479_vm1, %v476_v14, 0  ;;  %vm450_vm4 = vcmask 257216   ;;  %vm455_vm5 = vcmask 322816   ;;  %s1366_s19 = smov 112   ;;  %s1367_s20 = smov 96  }
  0x33   : > { %v421_v7 = vperm.slane %v419_v4, 0  ;;  %493 = vmatpush.bf16.xpose.msra.mxu0 %v484_v15  ;;  %vm460_vm6 = vcmask 388416   ;;  %vm465_vm7 = vcmask 454016   ;;  %vm470_vm8 = vcmask 519616   ;;  %s1368_s30 = smov 80   ;;  %p393_p4 = scmp.lt.s32.totalorder %s1352_s24, 1 }
  0x34   : > { %v432_v8 = vunpack.c.l.bf16 %v431_v6  ;;  %v568_v23 = vunpack.c.l.b16 %v476_v14  ;;  %vm404_vm9 = vcmask 7168   ;;  %v1369_v26 = vmov -inf   ;;  %s347_s13 = scalar_lea.vmem [#allocation11], %s1513_s1  ;;  %s1372_s1 = smov 120  }
  0x35   : > { %v423_v9 = vunpack.c.l.bf16 %v421_v7  ;;  %405 = vst.msk [vmem:[#allocation3] sm:$0xff] %vm404_vm9, %v1369_v26  ;;  %s394_s17 = scalar_select %p393_p4, %s1352_s24, 1  ;;  %vm506_vm10 = vcmask 64512   ;;  %v1370_v39 = vmov 0   ;;  %v1371_v40 = vmov 0.0  }
  0x36   : > { %v433_v10 = vadd.f32 %v432_v8, %v422_v5  ;;  %v569_v25 = vpack.c.b16 %v568_v23, %v568_v23  ;;  %406 = vst.msk [vmem:[#allocation3 + $0x8] sm:$0xff] %vm404_vm9, %v1369_v26  ;;  %1157 = vset.pattern.permute.xlu2 %v1370_v39  ;;  %1158 = vset.pattern.permute.xlu1 %v1370_v39  ;;  %v477_v57 = vld [vmem:[%s347_s13] sm:$0xf]  ;;  %vm542_vm11 = vcmask 1043456   ;;  %s1373_s23 = smov 104   ;;  %vm413_vm12 = vcmask 261120  }
  0x37   : > { %v424_v11 = vadd.f32 %v423_v9, %v422_v5  ;;  %407 = vst.msk [vmem:[#allocation3 + $0x10] sm:$0xff] %vm404_vm9, %v1369_v26  ;;  %s398_s11 = scalar_lea.vmem %s1702_s5, %s394_s17  ;;  %1159 = vset.pattern.permute.xlu0 %v1370_v39  ;;  %v544_v58 = vsel %vm542_vm11, %v477_v57, 0  ;;  %vm658_vm13 = vcmask 130112   ;;  %vm751_vm14 = vcmask 195712   ;;  %s1059_s26 = sshll.u32 %s1510_s25, 3 }
  0x38   : > { %v434_v12 = vpack.c.bf16 %v433_v10, %v433_v10  ;;  %408 = vst.msk [vmem:[#allocation3 + $0x18] sm:$0xff] %vm404_vm9, %v1369_v26  ;;  %v472_v27 = vld [vmem:[%s398_s11] sm:$0x1]  ;;  %553 = vmatpush.bf16.msra.mxu1 %v544_v58  ;;  %vm844_vm15 = vcmask 261312   ;;  %s1070_s29 = sshll.u32 %s1352_s24, 3  ;;  %s392_s16 = scalar_lea.vmem [#allocation12], %s1059_s26 }
  0x39   : > { %v425_v13 = vpack.c.bf16 %v424_v11, %v424_v11  ;;  %v473_v28 = vunpack.c.l.bf16 %v472_v27  ;;  %409 = vst.msk [vmem:[#allocation4] sm:$0xff] %vm404_vm9, %v1371_v40  ;;  %v630_v27 = vunpack.c.l.b16 %v477_v57  ;;  %s900_s15 = scalar_lea.hbm %s1703_s6, %s1070_s29  ;;  %s889_s24 = scalar_lea.sflag [#allocation8], %s1510_s25 }
  0x3a   : > { %436 = vrot.lane.b32.xlu0 %v434_v12, %s1362_s27  ;;  %447 = vrot.lane.b32.xlu1 %v434_v12, %s1363_s9  ;;  %410 = vst.msk [vmem:[#allocation4 + $0x8] sm:$0xff] %vm404_vm9, %v1371_v40 }
  0x3b   : > { %427 = vst.msk [vmem:[#allocation2] sm:$0xf] %vm426_vm0, %v425_v13  ;;  %457 = vrot.lane.b32.xlu2 %v434_v12, %s1364_s7  ;;  %v1060_v29 = vadd.f32 -1.0, %v473_v28  ;;  %v1555_v31 = vperm.slane %v473_v28, 0  ;;  %v631_v28 = vpack.c.b16 %v630_v27, %v630_v27  ;;  %vm884_vm0 = vcmask 195584  }
  0x3c   : > { %411 = vst.msk [vmem:[#allocation4 + $0x10] sm:$0xff] %vm404_vm9, %v1371_v40  ;;  %v1570_v41 = vld [vmem:[#allocation3] sm:$0xff] }
  0x3d   : > { %v475_v30 = vmul.f32 1000.0, %v1060_v29  ;;  %412 = vst.msk [vmem:[#allocation4 + $0x18] sm:$0xff] %vm404_vm9, %v1371_v40 }
  0x3e   : > { %414 = vst.msk [vmem:[#allocation5] sm:$0xff] %vm413_vm12, %v1371_v40 }
  0x3f   : > { %v1557_v34 = vperm.slane %v475_v30, 0  ;;  %v595_v30 = vld [vmem:[#allocation3 + $0x8] sm:$0xff] }
  0x42   : > { %442 = vrot.lane.b32.xlu0 %v425_v13, %s1362_s27  ;;  %452 = vrot.lane.b32.xlu1 %v425_v13, %s1363_s9 }
  0x43   : > { %462 = vrot.lane.b32.xlu2 %v425_v13, %s1364_s7 }
  0x4a   : > { %467 = vrot.lane.b32.xlu0 %v434_v12, %s1365_s18 }
  0x52   : > { %570 = vrot.lane.b32.xlu0 %v569_v25, %s1366_s19 }
  0x5a   : > { %666 = vrot.lane.b32.xlu0 %v569_v25, %s1367_s20 }
  0x62   : > { %759 = vrot.lane.b32.xlu0 %v569_v25, %s1368_s30 }
  0x95   : > { %v458_v16 = vpop.permute.xlu2 %457 }
  0x9d   : > { %v463_v21 = vpop.permute.xlu2 %462 }
  0xac   : > { %v437_v17 = vpop.permute.xlu0 %436  ;;  %v448_v18 = vpop.permute.xlu1 %447 }
  0xad   : > { %440 = vst.msk [vmem:[#allocation2] sm:$0xf] %vm439_vm2, %v437_v17 }
  0xb4   : > { %v443_v19 = vpop.permute.xlu0 %442  ;;  %v453_v20 = vpop.permute.xlu1 %452 }
  0xb5   : > { %446 = vst.msk [vmem:[#allocation2] sm:$0xf] %vm445_vm3, %v443_v19 }
  0xb6   : > { %451 = vst.msk [vmem:[#allocation2] sm:$0xf] %vm450_vm4, %v448_v18 }
  0xb7   : > { %456 = vst.msk [vmem:[#allocation2] sm:$0xf] %vm455_vm5, %v453_v20 }
  0xb8   : > { %461 = vst.msk [vmem:[#allocation2] sm:$0xf] %vm460_vm6, %v458_v16 }
  0xb9   : > { %466 = vst.msk [vmem:[#allocation2] sm:$0xf] %vm465_vm7, %v463_v21 }
  0xbc   : > { %v468_v22 = vpop.permute.xlu0 %467 }
  0xbd   : > { %471 = vst.msk [vmem:[#allocation2] sm:$0xf] %vm470_vm8, %v468_v22 }
  0xc4   : > { %v478_v24 = vld [vmem:[#allocation2] sm:$0xf]  ;;  %v571_v54 = vpop.permute.xlu0 %570 }
  0xc5   : > { %1061 = vmatmul.msk.bf16.vlgmr.msra.gmra.mxu0 %vm479_vm1, %v478_v24  ;;  %v561_v44 = vld [vmem:[#allocation2] sm:$0xf]  ;;  %v576_v55 = vsel %vm479_vm1, %v571_v54, 0 }
  0xc6   : > { %v563_v46 = vunpack.c.l.b16 %v561_v44  ;;  %v660_v48 = vld [vmem:[#allocation2] sm:$0xf]  ;;  %585 = vmatpush.bf16.xpose.msra.mxu2 %v576_v55 }
  0xc7   : > { %v662_v49 = vunpack.c.l.b16 %v660_v48  ;;  %v753_v51 = vld [vmem:[#allocation2] sm:$0xf] }
  0xc8   : > { %v564_v47 = vpack.c.b16 %v563_v46, %v563_v46  ;;  %v755_v52 = vunpack.c.l.b16 %v753_v51 }
  0xc9   : > { %v663_v50 = vpack.c.b16 %v662_v49, %v662_v49 }
  0xca   : > { %v756_v53 = vpack.c.b16 %v755_v52, %v755_v52 }
  0xcc   : > { %v667_v56 = vpop.permute.xlu0 %666 }
  0xcd   : > { %v672_v61 = vsel %vm479_vm1, %v667_v56, 0 }
  0xce   : > { %681 = vmatpush.bf16.xpose.msrb.mxu1 %v672_v61 }
  0xd4   : > { %v760_v59 = vpop.permute.xlu0 %759 }
  0xd5   : > { %v765_v60 = vsel %vm479_vm1, %v760_v59, 0 }
  0xd6   : > { %774 = vmatpush.bf16.xpose.msrb.mxu0 %v765_v60 }
 0x142   : > { %v495_v32 = vpop.f32.mrf.mxu0 }
 0x143   : > { %v499_v33 = vmul.f32 0.35355338, %v495_v32 }
 0x145   : > { %v501_v35 = vmul.f32 %v1555_v31, %v499_v33 }
 0x147   : > { %v503_v36 = vadd.f32 %v1557_v34, %v501_v35 }
 0x149   : > { %v507_v37 = vsel %vm506_vm10, %v503_v36, -inf }
 0x14a   : > { %508 = vmax.xlane.f32.xlu1 %v507_v37  ;;  %v497_v38 = vpop.f32.mrf.mxu0 }
 0x14b   : > { %v691_v38 = vld [vmem:[#allocation3 + $0x10] sm:$0xff] }
 0x1bd   : > { %v509_v42 = vpop.xlane.xlu1 %508 }
 0x1be   : > { %v1573_v43 = vmax.f32 %v1570_v41, %v509_v42 }
 0x1c0   : > { %v511_v45 = vsub.f32 %v1570_v41, %v1573_v43  ;;  %529 = vst.msk [vmem:[#allocation3] sm:$0xff] %vm404_vm9, %v1573_v43  ;;  %516 = vperm.xlu2 %1157, %v1573_v43   ;;  %v505_v43 = vld [vmem:[#allocation4] sm:$0xff] }
 0x1c2   : > { %v512_v48 = vmul.f32 1.442695, %v511_v45 }
 0x1c8   : > { %565 = vrot.lane.b32.xlu2 %v564_v47, %s1366_s19 }
 0x1d0   : > { %664 = vrot.lane.b32.xlu2 %v663_v50, %s1367_s20 }
 0x1d8   : > { %757 = vrot.lane.b32.xlu2 %v756_v53, %s1368_s30  ;;  %s1294_s30 = scalar_lea.hbm %s1703_s6, 16 }
 0x21a   : > { %v517_v62 = vpop.permute.xlu2 %516 }
 0x21b   : > { %v519_v63 = vsub.f32 %v503_v36, %v517_v62 }
 0x21d   : > { %v520_v0 = vmul.f32 1.442695, %v519_v63 }
 0x21f   : > { %1160 = vpow2.f32 %v520_v0 }
 0x222   : > { %v566_v1 = vpop.permute.xlu2 %565 }
 0x223   : > { %1063 = vmatmul.msk.bf16.vlgmr.msra.gmra.mxu2 %vm479_vm1, %v566_v1 }
 0x225   : > { %v1161_v2 = vpop.eup %1160 }
 0x226   : > { %v530_v3 = vmul.f32 %v1161_v2, %v1555_v31  ;;  %v523_v29 = vsel %vm506_vm10, %v1161_v2, 0.0 }
 0x228   : > { %v531_v4 = vpack.c.bf16 %v530_v3, %v530_v3 }
 0x22a   : > { %1062 = vmatmul.msk.bf16.vlgmr.msra.gmra.mxu1 %vm506_vm10, %v531_v4  ;;  %v665_v5 = vpop.permute.xlu2 %664 }
 0x232   : > { %v758_v6 = vpop.permute.xlu2 %757 }
 0x233   : > { %1067 = vmatmul.msk.bf16.vlgmr.msrb.gmra.mxu0 %vm479_vm1, %v758_v6 }
 0x23a   : > { %1065 = vmatmul.msk.bf16.vlgmr.msrb.gmra.mxu1 %vm479_vm1, %v665_v5 }
 0x2a6   : > { %v587_v7 = vpop.f32.mrf.mxu2 }
 0x2a7   : > { %v591_v8 = vmul.f32 0.35355338, %v587_v7  ;;  %v1593_v9 = vpop.f32.mrf.mxu1 }
 0x2a9   : > { %v592_v10 = vmul.f32 %v591_v8, %v1555_v31 }
 0x2ab   : > { %v1597_v11 = vadd.f32 %v592_v10, %v1557_v34 }
 0x2ad   : > { %v598_v12 = vsel %vm506_vm10, %v1597_v11, -inf }
 0x2ae   : > { %599 = vmax.xlane.f32.xlu0 %v598_v12  ;;  %v589_v13 = vpop.f32.mrf.mxu2 }
 0x2af   : > { %v557_v14 = vpop.f32.mrf.mxu1 }
 0x2b0   : > { %v776_v15 = vpop.f32.mrf.mxu0 }
 0x2b1   : > { %v780_v16 = vmul.f32 0.35355338, %v776_v15 }
 0x2b3   : > { %v781_v17 = vmul.f32 %v780_v16, %v1555_v31 }
 0x2b5   : > { %v1603_v18 = vadd.f32 %v781_v17, %v1557_v34  ;;  %v532_v17 = vld [vmem:[#allocation5] sm:$0xff] }
 0x2b7   : > { %v683_v19 = vpop.f32.mrf.mxu1  ;;  %v787_v20 = vsel %vm506_vm10, %v1603_v18, -inf }
 0x2b8   : > { %v687_v21 = vmul.f32 0.35355338, %v683_v19  ;;  %788 = vmax.xlane.f32.xlu1 %v787_v20  ;;  %v778_v22 = vpop.f32.mrf.mxu0 }
 0x2b9   : > { %v597_v22 = vld [vmem:[#allocation4 + $0x8] sm:$0xff] }
 0x2ba   : > { %v688_v23 = vmul.f32 %v687_v21, %v1555_v31 }
 0x2bc   : > { %v1609_v24 = vadd.f32 %v688_v23, %v1557_v34  ;;  %v784_v34 = vld [vmem:[#allocation3 + $0x18] sm:$0xff] }
 0x2be   : > { %v694_v25 = vsel %vm506_vm10, %v1609_v24, -inf }
 0x2bf   : > { %695 = vmax.xlane.f32.xlu2 %v694_v25  ;;  %v685_v26 = vpop.f32.mrf.mxu1 }
 0x2d7   : > { %632 = vrot.lane.b32.xlu2 %v631_v28, %s1372_s1 }
 0x300   : > { %524 = vadd.xlane.f32.xlu2 %v523_v29 }
 0x321   : > { %v600_v32 = vpop.xlane.xlu0 %599 }
 0x322   : > { %v601_v33 = vmax.f32 %v595_v30, %v600_v32 }
 0x324   : > { %619 = vst.msk [vmem:[#allocation3 + $0x8] sm:$0xff] %vm404_vm9, %v601_v33  ;;  %607 = vperm.xlu1 %1158, %v601_v33   ;;  %v602_v37 = vsub.f32 %v595_v30, %v601_v33 }
 0x326   : > { %v603_v39 = vmul.f32 1.442695, %v602_v37 }
 0x328   : > { %1162 = vpow2.f32 %v603_v39 }
 0x32b   : > { %v789_v35 = vpop.xlane.xlu1 %788 }
 0x32c   : > { %v790_v36 = vmax.f32 %v784_v34, %v789_v35  ;;  %725 = vrot.lane.b32.xlu1 %v631_v28, %s1366_s19 }
 0x32e   : > { %808 = vst.msk [vmem:[#allocation3 + $0x18] sm:$0xff] %vm404_vm9, %v790_v36  ;;  %v791_v49 = vsub.f32 %v784_v34, %v790_v36  ;;  %v1621_v50 = vpop.eup %1162 }
 0x32f   : > { %v613_v23 = vmul.f32 %v1621_v50, %v597_v22 }
 0x330   : > { %v792_v51 = vmul.f32 1.442695, %v791_v49 }
 0x332   : > { %v696_v42 = vpop.xlane.xlu2 %695 }
 0x333   : > { %v697_v44 = vmax.f32 %v691_v38, %v696_v42 }
 0x334   : > { %796 = vperm.xlu1 %1158, %v790_v36  }
 0x335   : > { %v698_v46 = vsub.f32 %v691_v38, %v697_v44  ;;  %715 = vst.msk [vmem:[#allocation3 + $0x10] sm:$0xff] %vm404_vm9, %v697_v44  ;;  %703 = vperm.xlu0 %1159, %v697_v44  }
 0x337   : > { %v699_v47 = vmul.f32 1.442695, %v698_v46 }
 0x339   : > { %1164 = vpow2.f32 %v699_v47 }
 0x33a   : > { %1166 = vpow2.f32 %v512_v48  ;;  %v633_v41 = vpop.permute.xlu2 %632 }
 0x33b   : > { %1168 = vpow2.f32 %v792_v51  ;;  %v638_v57 = vsel %vm542_vm11, %v633_v41, 0 }
 0x33c   : > { %818 = vrot.lane.b32.xlu1 %v631_v28, %s1373_s23  ;;  %647 = vmatpush.bf16.msra.mxu3 %v638_v57 }
 0x33d   : > { %625 = vperm.xlu0 %1159, %v1621_v50  }
 0x33f   : > { %v1624_v52 = vpop.eup %1164 }
 0x340   : > { %721 = vperm.xlu2 %1157, %v1624_v52   ;;  %v1167_v53 = vpop.eup %1166 }
 0x341   : > { %v1169_v54 = vpop.eup %1168  ;;  %v522_v45 = vmul.f32 %v1167_v53, %v505_v43 }
 0x344   : > { %535 = vperm.xlu1 %1158, %v1167_v53  }
 0x348   : > { %814 = vperm.xlu2 %1157, %v1169_v54  }
 0x373   : > { %v525_v55 = vpop.xlane.xlu2 %524 }
 0x374   : > { %v526_v56 = vadd.f32 %v525_v55, %v522_v45 }
 0x376   : > { %528 = vst.msk [vmem:[#allocation4] sm:$0xff] %vm404_vm9, %v526_v56 }
 0x37d   : > { %v849_v42 = vld [vmem:[#allocation4] sm:$0xff] }
 0x396   : > { %v608_v58 = vpop.permute.xlu1 %607 }
 0x397   : > { %v610_v59 = vsub.f32 %v1597_v11, %v608_v58 }
 0x399   : > { %v611_v60 = vmul.f32 1.442695, %v610_v59  ;;  %v693_v59 = vld [vmem:[#allocation4 + $0x10] sm:$0xff] }
 0x39a   : > { %v722_v51 = vpop.permute.xlu2 %721 }
 0x39b   : > { %1170 = vpow2.f32 %v611_v60  ;;  %v709_v60 = vmul.f32 %v1624_v52, %v693_v59 }
 0x39e   : > { %v726_v61 = vpop.permute.xlu1 %725 }
 0x39f   : > { %v731_v62 = vsel %vm542_vm11, %v726_v61, 0 }
 0x3a0   : > { %740 = vmatpush.bf16.msrb.mxu3 %v731_v62 }
 0x3a1   : > { %v1171_v63 = vpop.eup %1170 }
 0x3a2   : > { %v614_v0 = vsel %vm506_vm10, %v1171_v63, 0.0  ;;  %v620_v1 = vmul.f32 %v1171_v63, %v1555_v31  ;;  %v815_v45 = vpop.permute.xlu2 %814 }
 0x3a3   : > { %615 = vadd.xlane.f32.xlu1 %v614_v0 }
 0x3a4   : > { %v621_v2 = vpack.c.bf16 %v620_v1, %v620_v1 }
 0x3a6   : > { %v797_v3 = vpop.permute.xlu1 %796  ;;  %1064 = vmatmul.msk.bf16.vlgmr.msra.gmra.mxu3 %vm506_vm10, %v621_v2 }
 0x3a7   : > { %v799_v40 = vsub.f32 %v1603_v18, %v797_v3  ;;  %v704_v4 = vpop.permute.xlu0 %703 }
 0x3a8   : > { %v706_v5 = vsub.f32 %v1609_v24, %v704_v4 }
 0x3a9   : > { %v800_v6 = vmul.f32 1.442695, %v799_v40 }
 0x3aa   : > { %v707_v7 = vmul.f32 1.442695, %v706_v5 }
 0x3ab   : > { %1172 = vpow2.f32 %v800_v6 }
 0x3ac   : > { %1174 = vpow2.f32 %v707_v7 }
 0x3ae   : > { %v819_v8 = vpop.permute.xlu1 %818 }
 0x3af   : > { %v824_v10 = vsel %vm542_vm11, %v819_v8, 0  ;;  %v626_v46 = vpop.permute.xlu0 %625 }
 0x3b0   : > { %833 = vmatpush.bf16.msrb.mxu2 %v824_v10 }
 0x3b1   : > { %v1173_v11 = vpop.eup %1172 }
 0x3b2   : > { %v1175_v12 = vpop.eup %1174  ;;  %v803_v13 = vsel %vm506_vm10, %v1173_v11, 0.0  ;;  %v809_v14 = vmul.f32 %v1173_v11, %v1555_v31 }
 0x3b3   : > { %804 = vadd.xlane.f32.xlu1 %v803_v13  ;;  %v716_v15 = vmul.f32 %v1175_v12, %v1555_v31  ;;  %v786_v31 = vld [vmem:[#allocation4 + $0x18] sm:$0xff]  ;;  %v710_v39 = vsel %vm506_vm10, %v1175_v12, 0.0 }
 0x3b4   : > { %v810_v16 = vpack.c.bf16 %v809_v14, %v809_v14  ;;  %v802_v26 = vmul.f32 %v1169_v54, %v786_v31 }
 0x3b5   : > { %v717_v18 = vpack.c.bf16 %v716_v15, %v716_v15 }
 0x3b6   : > { %1068 = vmatmul.msk.bf16.vlgmr.msrb.gmra.mxu2 %vm506_vm10, %v810_v16  ;;  %v536_v19 = vpop.permute.xlu1 %535 }
 0x3b7   : > { %v538_v20 = vmul.f32 %v536_v19, %v532_v17  ;;  %1066 = vmatmul.msk.bf16.vlgmr.msrb.gmra.mxu3 %vm506_vm10, %v717_v18 }
 0x3b9   : > { %v559_v21 = vadd.f32 %v1593_v9, %v538_v20 }
 0x3bb   : > { %560 = vst.msk [vmem:[#allocation5] sm:$0xff] %vm506_vm10, %v559_v21 }
 0x3c2   : > { %v622_v47 = vld [vmem:[#allocation5] sm:$0xff] }
 0x3c3   : > { %v628_v48 = vmul.f32 %v626_v46, %v622_v47 }
 0x416   : > { %v616_v24 = vpop.xlane.xlu1 %615 }
 0x417   : > { %v617_v25 = vadd.f32 %v616_v24, %v613_v23 }
 0x419   : > { %618 = vst.msk [vmem:[#allocation4 + $0x8] sm:$0xff] %vm404_vm9, %v617_v25 }
 0x420   : > { %v858_v9 = vld [vmem:[#allocation4 + $0x8] sm:$0xff] }
 0x421   : > { %1176 = vrcp.f32 %v858_v9 }
 0x426   : > { %v805_v27 = vpop.xlane.xlu1 %804 }
 0x427   : > { %v806_v28 = vadd.f32 %v805_v27, %v802_v26  ;;  %v1177_v35 = vpop.eup %1176 }
 0x429   : > { %807 = vst.msk [vmem:[#allocation4 + $0x18] sm:$0xff] %vm404_vm9, %v806_v28  ;;  %v649_v29 = vpop.f32.mrf.mxu3 }
 0x42a   : > { %654 = vrot.lane.b32.xlu0 %v649_v29, %s1362_s27  ;;  %s902_s27 = sshll.u32 %s392_s16, 4  ;;  %s903_s27 = int_to_ptr.vmem [resolvable:$true] %s902_s27 }
 0x430   : > { %v874_v34 = vld [vmem:[#allocation4 + $0x18] sm:$0xff] }
 0x431   : > { %v651_v30 = vpop.f32.mrf.mxu3  ;;  %1178 = vrcp.f32 %v874_v34 }
 0x432   : > { %1180 = vrcp.f32 %v849_v42 }
 0x437   : > { %v1179_v38 = vpop.eup %1178 }
 0x438   : > { %v1181_v44 = vpop.eup %1180 }
 0x439   : > { %v835_v32 = vpop.f32.mrf.mxu2 }
 0x43a   : > { %840 = vrot.lane.b32.xlu2 %v835_v32, %s1364_s7  ;;  %v742_v33 = vpop.f32.mrf.mxu3 }
 0x43b   : > { %747 = vrot.lane.b32.xlu1 %v742_v33, %s1363_s9  ;;  %s904_s9 = sshll.u32 %s900_s15, 4  ;;  %s905_s9 = int_to_ptr.hbm [resolvable:$true] %s904_s9 }
 0x43c   : > { %s1288_s7 = sshra.s32 %s905_s9, 4  ;;  %s1289_s7 = int_to_ptr.hbm [resolvable:$true] %s1288_s7 }
 0x43d   : > { %s1290_s18 = scalar_lea.hbm %s1289_s7, 8  ;;  %p1295_p8 = scmp.lt.s32.totalorder %s1289_s7, %s1703_s6 }
 0x43e   : > { %p1291_p5 = scmp.ne.s32.totalorder %s1289_s7, %s1290_s18  ;;  %p1296_p10 = scmp.lt.s32.totalorder %s1294_s30, %s1290_s18 }
 0x440   : > { %p1292_p6 = pnand %p1291_p5, %p1464_p9  ;;  %p1297_p13 = por %p1296_p10, %p1295_p8 }
 0x441   : > { %v837_v36 = vpop.f32.mrf.mxu2 }
 0x442   : > { %v744_v37 = vpop.f32.mrf.mxu3  ;;  %862 = vperm.xlu2 %1157, %v1177_v35   ;;  %p1293_p7 = pneg %p1292_p6 }
 0x444   : > { %p1298_p0 = pnand %p1297_p13, %p1293_p7 }
 0x44a   : > { %878 = vperm.xlu2 %1157, %v1179_v38  }
 0x454   : > { %711 = vadd.xlane.f32.xlu0 %v710_v39 }
 0x468   : > { %854 = vperm.xlu0 %1159, %v1181_v44  }
 0x494   : > { %v841_v57 = vpop.permute.xlu2 %840 }
 0x49c   : > { %v655_v49 = vpop.permute.xlu0 %654  ;;  %v863_v1 = vpop.permute.xlu2 %862 }
 0x49d   : > { %v657_v50 = vadd.f32 %v655_v49, %v628_v48 }
 0x49f   : > { %659 = vst.msk [vmem:[#allocation5] sm:$0xff] %vm658_vm13, %v657_v50 }
 0x4a4   : > { %v879_v5 = vpop.permute.xlu2 %878 }
 0x4a6   : > { %v718_v53 = vld [vmem:[#allocation5] sm:$0xff] }
 0x4a7   : > { %v724_v54 = vmul.f32 %v722_v51, %v718_v53 }
 0x4ad   : > { %v748_v41 = vpop.permute.xlu1 %747 }
 0x4ae   : > { %v750_v43 = vadd.f32 %v748_v41, %v724_v54 }
 0x4b0   : > { %752 = vst.msk [vmem:[#allocation5] sm:$0xff] %vm751_vm14, %v750_v43 }
 0x4b7   : > { %v811_v55 = vld [vmem:[#allocation5] sm:$0xff] }
 0x4b8   : > { %v817_v56 = vmul.f32 %v815_v45, %v811_v55 }
 0x4ba   : > { %v843_v58 = vadd.f32 %v841_v57, %v817_v56 }
 0x4bc   : > { %845 = vst.msk [vmem:[#allocation5] sm:$0xff] %vm844_vm15, %v843_v58 }
 0x4c3   : > { %v851_v3 = vld [vmem:[#allocation5] sm:$0xff] }
 0x4c4   : > { %v865_v52 = vmul.f32 %v863_v1, %v851_v3  ;;  %v881_v7 = vmul.f32 %v879_v5, %v851_v3 }
 0x4c7   : > { %v712_v61 = vpop.xlane.xlu0 %711 }
 0x4c8   : > { %v713_v62 = vadd.f32 %v712_v61, %v709_v60 }
 0x4ca   : > { %714 = vst.msk [vmem:[#allocation4 + $0x10] sm:$0xff] %vm404_vm9, %v713_v62 }
 0x4d1   : > { %v866_v63 = vld [vmem:[#allocation4 + $0x10] sm:$0xff] }
 0x4d2   : > { %1182 = vrcp.f32 %v866_v63 }
 0x4d8   : > { %v1183_v0 = vpop.eup %1182 }
 0x4d9   : > { %870 = vperm.xlu1 %1158, %v1183_v0  }
 0x4da   : > { %v855_v2 = vpop.permute.xlu0 %854 }
 0x4db   : > { %v857_v40 = vmul.f32 %v855_v2, %v851_v3 }
 0x4dd   : > { %v882_v8 = vsel %vm506_vm10, %v857_v40, %v865_v52 }
 0x54b   : > { %v871_v4 = vpop.permute.xlu1 %870 }
 0x54c   : > { %v873_v6 = vmul.f32 %v871_v4, %v851_v3 }
 0x54e   : > { %v883_v10 = vsel %vm479_vm1, %v882_v8, %v873_v6 }
 0x54f   : > { %v885_v11 = vsel %vm884_vm0, %v883_v10, %v881_v7 }
 0x550   : > { %887 = vst.msk [vmem:[%s392_s16] sm:$0xff] %vm413_vm12, %v885_v11 }
 0x551   : > { %1301 = shalt.err (!%p1298_p0)
}
 0x552   : > { %1079 = dma.vmem_to_hbm [thread:$0]  (%p1464_p9), %s903_s27, 128, %s905_s9, %s889_s24  }
 0x553 PF: > { %s1725_s8 = sld [smem:[#allocation18_spill]]  ;;  %s916_s11 = sand.u32 1, %s1340_s21  }
 0x554   : > { %p1092_p1 = pnand %p1048_p12, %p1471_p11  ;;  %s917_s13 = scalar_lea.sflag [#allocation8], %s916_s11 }
 0x556   : > { %p1093_p2 = pneg %p1092_p1 }
 0x558   : > { %1335 = dma.done.wait (%p1093_p2), %s917_s13, 128  }
 0x559   : > { %1337 = vsyncadd (%p1093_p2), %s917_s13, 4294967168  ;;  %s25_s26 = sadd.s32 1, %s1725_s8   ;;  %s1726_s1 = sld [smem:[#allocation16_spill]] }
 0x55a   : > { %p22_p3 = scmp.ge.s32.totalorder %s25_s26, 4   ;;  %s1727_s23 = sld [smem:[#allocation20_spill]] }
 0x55b   : > { %s1728_s24 = sld [smem:[#allocation17_spill]]  ;;  %s1730_s21 = smov %s1344_s22 }
 0x55c   : > { %s1729_s25 = sld [smem:[#allocation19_spill]]  ;;  %24 = sbr.rel (!%p22_p3) target bundleno = 10 (0xa), region = 130 }
 0x55f   : > { %s1731_s22 = smov %s1726_s1 }
 0x561   :  { %923 = vsyncpa [#allocation7], 1 }
 0x562   :  { %925 = vsyncpa [#allocation7 + $0x1], 1 }
 0x563   :  { %926 = vsyncpa [#allocation10], 1 }
 0x564   :  { %928 = vsyncpa [#allocation10 + $0x1], 1 }
 0x565   :  { %929 = vsyncpa [#allocation8], 1 }
 0x566   :  { %931 = vsyncpa [#allocation8 + $0x1], 1 }

</bundles_post_ra>
